<compile_context>
chip_gen: v5e
topology: v5e:2x2
jax: 0.10.0
libtpu: 0.0.40
codegen_flags: <defaults>
</compile_context>

<pallas_src>
import functools

import jax
import jax.numpy as jnp
from jax import lax
from jax.experimental import pallas as pl
from jax.experimental.pallas import tpu as pltpu


def _rup8(n):
    return ((n + 7) // 8) * 8


# --------------------------- fully fused forward + loss kernel ---------------------------
def fused_model_kernel(feat_ref, w_ref, out_ref, *,
                       B, S, H, dh, E, A, D, r_ap, r_qkv, r_o, r_dd):
    f32 = jnp.float32
    bf16 = jnp.bfloat16
    BS = B * S
    Hdh = H * dh

    # ---- unpack the lane-dense input slab (static views; no extra DMAs) ----
    fd = feat_ref[:, 0:1]                                    # [BS, 1]
    fa = feat_ref[:, 1:2]                                    # [BS, 1]
    pos_i = feat_ref[:, 2:3].astype(jnp.int32)               # [BS, 1] exact position ids
    label = feat_ref[0:B, 3:4]                               # [B, 1] float targets

    # ---- unpack the row-packed 1-row parameters from the weight slab ----
    w_enc = w_ref[0:1, 0:E]
    b_enc = w_ref[1:2, 0:E]
    w_a1 = w_ref[2:3, 0:A]
    b_a1 = w_ref[3:4, 0:A]
    b_a2 = w_ref[4:5, 0:E]
    b_o = w_ref[5:6, 0:D]
    b_dec = w_ref[6:7, 0:E]
    b_det = w_ref[7:8, 0:1]

    # ---- EncoderModel: Linear(1, E) + ReLU (rank-1, stays on the VPU) ----
    sub = jnp.maximum(fd * w_enc + b_enc, 0.0)               # [BS, E]

    # ---- ANAugmentModel stage 1: Linear(1, A) + ReLU ----
    hmid = jnp.maximum(fa * w_a1 + b_a1, 0.0)                # [BS, A]

    # ---- fused (augmenter stage 2 + positional lookup): one [BS,A+S]@[A+S,E] matmul ----
    col = lax.broadcasted_iota(jnp.int32, (BS, S), 1)
    onehot = (pos_i == col).astype(f32)                      # [BS, S]
    ap_in = jnp.concatenate([hmid, onehot], axis=1)          # [BS, A+S]
    w_ap = w_ref[r_ap:r_ap + A + S, 0:E]                     # [[w_a2],[pos_table]]
    x = sub + b_a2 + jnp.dot(ap_in.astype(bf16), w_ap.astype(bf16),
                             preferred_element_type=f32)     # [BS, E]

    # ---- fused QKV projection ----
    w_qkv = w_ref[r_qkv:r_qkv + E, 0:3 * Hdh]
    qkv = jnp.dot(x.astype(bf16), w_qkv.astype(bf16),
                  preferred_element_type=f32)                # [BS, 3*H*dh]

    # ---- multi-head self-attention, per-head output projection accumulated into seq ----
    # (static tiny H loop; head-output concat eliminated: seq += oh @ w_o[h])
    scale = 1.0 / (dh ** 0.5)
    seq = b_o                                                # [1, D]; broadcasts on first add
    for h in range(H):
        qh = qkv[:, h * dh:(h + 1) * dh].reshape(B, S, dh)
        kh = qkv[:, Hdh + h * dh:Hdh + (h + 1) * dh].reshape(B, S, dh)
        vh = qkv[:, 2 * Hdh + h * dh:2 * Hdh + (h + 1) * dh].reshape(B, S, dh)
        att = jnp.einsum('bqd,bkd->bqk', qh.astype(bf16), kh.astype(bf16),
                         preferred_element_type=f32) * scale           # [B, S, S]
        att = att - jnp.max(att, axis=-1, keepdims=True)
        pexp = jnp.exp(att)
        prob = pexp * pl.reciprocal(jnp.sum(pexp, axis=-1, keepdims=True), approx=True)
        oh = jnp.einsum('bqk,bkd->bqd', prob.astype(bf16), vh.astype(bf16),
                        preferred_element_type=f32).reshape(BS, dh)    # [BS, dh]
        w_oh = w_ref[r_o + h * dh:r_o + (h + 1) * dh, 0:D]
        seq = seq + jnp.dot(oh.astype(bf16), w_oh.astype(bf16),
                            preferred_element_type=f32)                # [BS, D]

    # ---- fused decoder + detector: one [BS,D]@[D,E+1] matmul ----
    w_dd = w_ref[r_dd:r_dd + D, 0:E + 1]                      # [w_dec | w_det]
    y = jnp.dot(seq.astype(bf16), w_dd.astype(bf16),
                preferred_element_type=f32)                   # [BS, E+1]
    dec = y[:, 0:E] + b_dec                                   # decoder output     [BS, E]
    det = y[:, E:E + 1]                                       # per-row det logits [BS, 1]
    # mean∘linear == linear∘mean: anomaly score per batch element
    score = jnp.mean(det.reshape(B, S, 1), axis=1) + b_det    # [B, 1]

    # ---- KLDivLoss(batchmean)(log_softmax(sub, feat), softmax(dec, feat)) ----
    m_in = jnp.max(sub, axis=-1, keepdims=True)
    log_p_in = (sub - m_in) - jnp.log(jnp.sum(jnp.exp(sub - m_in), axis=-1, keepdims=True))
    m_t = jnp.max(dec, axis=-1, keepdims=True)
    log_t = (dec - m_t) - jnp.log(jnp.sum(jnp.exp(dec - m_t), axis=-1, keepdims=True))
    tgt = jnp.exp(log_t)
    kl = jnp.sum(tgt * (log_t - log_p_in)) * (1.0 / B)        # batchmean divides by dim-0 = B

    # ---- nn.CrossEntropyLoss()(squeeze(score, 1), float(label)): 1-D logits / prob target
    m_s = jnp.max(score)
    lse = jnp.log(jnp.sum(jnp.exp(score - m_s))) + m_s
    ce = -jnp.sum(label * (score - lse))
    loss = ce + kl

    # ---- pack outputs into one lane-dense row: score in lanes [0,B), loss in lane B ----
    lane = lax.broadcasted_iota(jnp.int32, (B, 128), 1)
    row = lax.broadcasted_iota(jnp.int32, (B, 128), 0)
    packed = jnp.sum(jnp.where(lane == row, score, 0.0), axis=0, keepdims=True)  # [1, 128]
    lane1 = lax.broadcasted_iota(jnp.int32, (1, 128), 1)
    out_ref[...] = packed + jnp.where(lane1 == B, loss, 0.0)


# ---------------------------------- parameters -------------------------------------------
def init_params(key, E, A, D, S, H):
    dh = E // H
    ks = jax.random.split(key, 10)
    s = 0.1
    f32 = jnp.float32
    return dict(
        w_enc=(jax.random.normal(ks[0], (1, E)) * s).astype(f32),
        b_enc=jnp.zeros((1, E), f32),
        w_a1=(jax.random.normal(ks[1], (1, A)) * s).astype(f32),
        b_a1=jnp.zeros((1, A), f32),
        w_a2=(jax.random.normal(ks[2], (A, E)) * s).astype(f32),
        b_a2=jnp.zeros((1, E), f32),
        pos_table=(jax.random.normal(ks[3], (S, E)) * s).astype(f32),
        wq=(jax.random.normal(ks[4], (H, E, dh)) * s).astype(f32),
        wk=(jax.random.normal(ks[5], (H, E, dh)) * s).astype(f32),
        wv=(jax.random.normal(ks[6], (H, E, dh)) * s).astype(f32),
        wo=(jax.random.normal(ks[7], (H, dh, D)) * s).astype(f32),
        bo=jnp.zeros((1, D), f32),
        wdec=(jax.random.normal(ks[8], (D, E)) * s).astype(f32),
        bdec=jnp.zeros((1, E), f32),
        wdet=(jax.random.normal(ks[9], (D, 1)) * s).astype(f32),
        bdet=jnp.zeros((1, 1), f32),
    )


# ---------------------------- wrapper (mode == 'train') ----------------------------------
def model_forward(params, feature_dg, feature_an, feature_pos, label, num_heads=None):
    del num_heads  # head count comes from the param shapes
    B, S, _ = feature_dg.shape
    E = params["w_enc"].shape[1]
    A = params["w_a1"].shape[1]
    D = params["wo"].shape[-1]
    H = params["wq"].shape[0]
    dh = params["wq"].shape[-1]
    BS = B * S
    Hdh = H * dh
    f32 = jnp.float32
    assert BS % 8 == 0 and B + 1 <= 128

    # ---- pack dynamic inputs into one lane-dense [BS, 128] slab (one input DMA) ----
    feat = jnp.zeros((BS, 128), f32)
    feat = feat.at[:, 0].set(feature_dg.reshape(BS).astype(f32))
    feat = feat.at[:, 1].set(feature_an.reshape(BS).astype(f32))
    feat = feat.at[:, 2].set(feature_pos.reshape(BS).astype(f32))   # exact for ids < 2^24
    feat = feat.at[0:B, 3].set(jnp.asarray(label, f32).reshape(B))

    # ---- fuse + pack every weight/bias into one lane-dense slab (one weight DMA) ----
    wq_flat = jnp.transpose(params["wq"], (1, 0, 2)).reshape(E, Hdh)
    wk_flat = jnp.transpose(params["wk"], (1, 0, 2)).reshape(E, Hdh)
    wv_flat = jnp.transpose(params["wv"], (1, 0, 2)).reshape(E, Hdh)
    w_qkv = jnp.concatenate([wq_flat, wk_flat, wv_flat], axis=1)        # [E, 3*Hdh]
    w_o = params["wo"].reshape(Hdh, D)                                  # [Hdh, D]
    w_ap = jnp.concatenate([params["w_a2"], params["pos_table"]], axis=0)   # [A+S, E]
    w_dd = jnp.concatenate([params["wdec"], params["wdet"]], axis=1)         # [D, E+1]

    r_ap = 8
    r_qkv = r_ap + _rup8(A + S)
    r_o = r_qkv + _rup8(E)
    r_dd = r_o + _rup8(Hdh)
    rows = _rup8(r_dd + D)
    cols = max(128, ((max(E, A, D, 3 * Hdh, E + 1) + 127) // 128) * 128)

    wslab = jnp.zeros((rows, cols), f32)
    wslab = wslab.at[0, 0:E].set(params["w_enc"].reshape(E))
    wslab = wslab.at[1, 0:E].set(params["b_enc"].reshape(E))
    wslab = wslab.at[2, 0:A].set(params["w_a1"].reshape(A))
    wslab = wslab.at[3, 0:A].set(params["b_a1"].reshape(A))
    wslab = wslab.at[4, 0:E].set(params["b_a2"].reshape(E))
    wslab = wslab.at[5, 0:D].set(params["bo"].reshape(D))
    wslab = wslab.at[6, 0:E].set(params["bdec"].reshape(E))
    wslab = wslab.at[7, 0:1].set(params["bdet"].reshape(1))
    wslab = wslab.at[r_ap:r_ap + A + S, 0:E].set(w_ap)
    wslab = wslab.at[r_qkv:r_qkv + E, 0:3 * Hdh].set(w_qkv)
    wslab = wslab.at[r_o:r_o + Hdh, 0:D].set(w_o)
    wslab = wslab.at[r_dd:r_dd + D, 0:E + 1].set(w_dd)

    kernel = functools.partial(fused_model_kernel, B=B, S=S, H=H, dh=dh,
                               E=E, A=A, D=D, r_ap=r_ap, r_qkv=r_qkv,
                               r_o=r_o, r_dd=r_dd)

    # advisory cost estimate for XLA scheduling around the fused custom call
    flops = int(2 * BS * ((A + S) * E + E * 3 * Hdh + Hdh * D + D * (E + 1))
                + 4 * B * H * S * S * dh)
    transcendentals = int(B * H * S * S + 2 * BS * E + B * H * S + B + 4)
    bytes_accessed = int(4 * (feat.size + wslab.size + 128))

    out = pl.pallas_call(
        kernel,
        out_shape=jax.ShapeDtypeStruct((1, 128), jnp.float32),
        grid=(1,),
        in_specs=[pl.BlockSpec((BS, 128), lambda i: (0, 0)),
                  pl.BlockSpec((rows, cols), lambda i: (0, 0))],
        out_specs=pl.BlockSpec((1, 128), lambda i: (0, 0)),
        compiler_params=pltpu.CompilerParams(dimension_semantics=("arbitrary",)),
        cost_estimate=pl.CostEstimate(flops=flops, transcendentals=transcendentals,
                                      bytes_accessed=bytes_accessed),
    )(feat, wslab)

    score = out[0, 0:B].reshape(B, 1)
    loss = out[0, B]
    # TODO(synk): 'test'/'embedding' modes (sklearn roc_auc/AP, argsort top-k, PCA, file
    # I/O) are host-side and have no Pallas equivalent.
    return loss, score


if __name__ == "__main__":
    key = jax.random.PRNGKey(0)
    B = 2                      # batch (edges)
    C, T = 4, 8                # num_context_node, time_window_len
    S = C * T                  # sequence length = 32
    E = 32                     # embedding_output_dim
    A = 16                     # an_layer_size
    D = 32                     # transformer_output_dim
    H = 2                      # attention_head_num

    k1, k2, k3, kp = jax.random.split(key, 4)
    feature_dg = jax.random.normal(k1, (B, S, 1), jnp.float32)
    feature_an = jax.random.normal(k2, (B, S, 1), jnp.float32)
    feature_pos = jax.random.randint(k3, (B, S), 0, S)
    label = jnp.array([0.0, 1.0], jnp.float32)

    params = init_params(kp, E, A, D, S, H)

    fwd = jax.jit(model_forward, static_argnums=(5,))
    loss, score = fwd(params, feature_dg, feature_an, feature_pos, label, H)
    jax.block_until_ready((loss, score))
    print("KERNEL_OK")
</pallas_src>

<mosaic_0001>
module attributes {stable_mosaic.version = 11 : i64} {
  func.func @fused_model_kernel(%arg0: i32, %arg1: memref<64x128xf32, #tpu.memory_space<vmem>>, %arg2: memref<152x128xf32, #tpu.memory_space<vmem>>, %arg3: memref<1x128xf32, #tpu.memory_space<vmem>>) attributes {dimension_semantics = [#tpu.dimension_semantics<arbitrary>], iteration_bounds = array<i64: 1>, scalar_prefetch = 0 : i64, scratch_operands = 0 : i64, tpu.core_type = #tpu.core_type<tc>, window_params = [{pipeline_mode = #tpu.pipeline_mode<synchronous>, transform_indices = @transform_0, window_bounds = array<i64: 64, 128>}, {pipeline_mode = #tpu.pipeline_mode<synchronous>, transform_indices = @transform_1, window_bounds = array<i64: 152, 128>}, {pipeline_mode = #tpu.pipeline_mode<synchronous>, transform_indices = @transform_2, window_bounds = array<i64: 1, 128>}]} {
    %c0 = arith.constant 0 : index
    %c0_0 = arith.constant 0 : index
    %0 = vector.load %arg1[%c0, %c0_0] : memref<64x128xf32, #tpu.memory_space<vmem>>, vector<64x1xf32>
    %c0_1 = arith.constant 0 : index
    %c1 = arith.constant 1 : index
    %1 = vector.load %arg1[%c0_1, %c1] : memref<64x128xf32, #tpu.memory_space<vmem>>, vector<64x1xf32>
    %c0_2 = arith.constant 0 : index
    %c2 = arith.constant 2 : index
    %2 = vector.load %arg1[%c0_2, %c2] : memref<64x128xf32, #tpu.memory_space<vmem>>, vector<64x1xf32>
    %3 = arith.fptosi %2 : vector<64x1xf32> to vector<64x1xi32>
    %c0_3 = arith.constant 0 : index
    %c3 = arith.constant 3 : index
    %4 = vector.load %arg1[%c0_3, %c3] : memref<64x128xf32, #tpu.memory_space<vmem>>, vector<2x1xf32>
    %c0_4 = arith.constant 0 : index
    %c0_5 = arith.constant 0 : index
    %5 = vector.load %arg2[%c0_4, %c0_5] : memref<152x128xf32, #tpu.memory_space<vmem>>, vector<1x32xf32>
    %c1_6 = arith.constant 1 : index
    %c0_7 = arith.constant 0 : index
    %6 = vector.load %arg2[%c1_6, %c0_7] : memref<152x128xf32, #tpu.memory_space<vmem>>, vector<1x32xf32>
    %c2_8 = arith.constant 2 : index
    %c0_9 = arith.constant 0 : index
    %7 = vector.load %arg2[%c2_8, %c0_9] : memref<152x128xf32, #tpu.memory_space<vmem>>, vector<1x16xf32>
    %c3_10 = arith.constant 3 : index
    %c0_11 = arith.constant 0 : index
    %8 = vector.load %arg2[%c3_10, %c0_11] : memref<152x128xf32, #tpu.memory_space<vmem>>, vector<1x16xf32>
    %c4 = arith.constant 4 : index
    %c0_12 = arith.constant 0 : index
    %9 = vector.load %arg2[%c4, %c0_12] : memref<152x128xf32, #tpu.memory_space<vmem>>, vector<1x32xf32>
    %c5 = arith.constant 5 : index
    %c0_13 = arith.constant 0 : index
    %10 = vector.load %arg2[%c5, %c0_13] : memref<152x128xf32, #tpu.memory_space<vmem>>, vector<1x32xf32>
    %c6 = arith.constant 6 : index
    %c0_14 = arith.constant 0 : index
    %11 = vector.load %arg2[%c6, %c0_14] : memref<152x128xf32, #tpu.memory_space<vmem>>, vector<1x32xf32>
    %c7 = arith.constant 7 : index
    %c0_15 = arith.constant 0 : index
    %12 = vector.load %arg2[%c7, %c0_15] : memref<152x128xf32, #tpu.memory_space<vmem>>, vector<1x1xf32>
    %13 = vector.broadcast %0 : vector<64x1xf32> to vector<64x32xf32>
    %14 = vector.broadcast %5 : vector<1x32xf32> to vector<64x32xf32>
    %15 = arith.mulf %13, %14 : vector<64x32xf32>
    %16 = vector.broadcast %6 : vector<1x32xf32> to vector<64x32xf32>
    %17 = arith.addf %15, %16 : vector<64x32xf32>
    %cst = arith.constant 0.000000e+00 : f32
    %18 = vector.broadcast %cst : f32 to vector<64x32xf32>
    %19 = arith.maximumf %17, %18 : vector<64x32xf32>
    %20 = vector.broadcast %1 : vector<64x1xf32> to vector<64x16xf32>
    %21 = vector.broadcast %7 : vector<1x16xf32> to vector<64x16xf32>
    %22 = arith.mulf %20, %21 : vector<64x16xf32>
    %23 = vector.broadcast %8 : vector<1x16xf32> to vector<64x16xf32>
    %24 = arith.addf %22, %23 : vector<64x16xf32>
    %cst_16 = arith.constant 0.000000e+00 : f32
    %25 = vector.broadcast %cst_16 : f32 to vector<64x16xf32>
    %26 = arith.maximumf %24, %25 : vector<64x16xf32>
    %27 = tpu.iota {dimensions = array<i32: 1>} : vector<64x32xi32>
    %28 = vector.broadcast %3 : vector<64x1xi32> to vector<64x32xi32>
    %29 = arith.cmpi eq, %28, %27 : vector<64x32xi32>
    %30 = arith.extui %29 : vector<64x32xi1> to vector<64x32xi32>
    %31 = arith.sitofp %30 : vector<64x32xi32> to vector<64x32xf32>
    %32 = tpu.concatenate %26, %31 in 1 : vector<64x16xf32>, vector<64x32xf32> -> vector<64x48xf32>
    %c8 = arith.constant 8 : index
    %c0_17 = arith.constant 0 : index
    %33 = vector.load %arg2[%c8, %c0_17] : memref<152x128xf32, #tpu.memory_space<vmem>>, vector<48x32xf32>
    %34 = vector.broadcast %9 : vector<1x32xf32> to vector<64x32xf32>
    %35 = arith.addf %19, %34 : vector<64x32xf32>
    %36 = arith.truncf %32 : vector<64x48xf32> to vector<64x48xbf16>
    %37 = arith.truncf %33 : vector<48x32xf32> to vector<48x32xbf16>
    %cst_18 = arith.constant dense<0.000000e+00> : vector<64x32xf32>
    %38 = tpu.matmul %36, %37, %cst_18 {dimension_numbers = #tpu.dot_dimension_numbers<[1], [0], [0], [1], [0, 0, 1, 1], [], []>} : vector<64x48xbf16>, vector<48x32xbf16>, vector<64x32xf32> -> vector<64x32xf32>
    %39 = arith.addf %35, %38 : vector<64x32xf32>
    %c56 = arith.constant 56 : index
    %c0_19 = arith.constant 0 : index
    %40 = vector.load %arg2[%c56, %c0_19] : memref<152x128xf32, #tpu.memory_space<vmem>>, vector<32x96xf32>
    %41 = arith.truncf %39 : vector<64x32xf32> to vector<64x32xbf16>
    %42 = arith.truncf %40 : vector<32x96xf32> to vector<32x96xbf16>
    %cst_20 = arith.constant dense<0.000000e+00> : vector<64x96xf32>
    %43 = tpu.matmul %41, %42, %cst_20 {dimension_numbers = #tpu.dot_dimension_numbers<[1], [0], [0], [1], [0, 0, 1, 1], [], []>} : vector<64x32xbf16>, vector<32x96xbf16>, vector<64x96xf32> -> vector<64x96xf32>
    %44 = vector.extract_strided_slice %43 {offsets = [0, 0], sizes = [64, 16], strides = [1, 1]} : vector<64x96xf32> to vector<64x16xf32>
    %45 = vector.shape_cast %44 : vector<64x16xf32> to vector<2x32x16xf32>
    %46 = vector.extract_strided_slice %43 {offsets = [0, 32], sizes = [64, 16], strides = [1, 1]} : vector<64x96xf32> to vector<64x16xf32>
    %47 = vector.shape_cast %46 : vector<64x16xf32> to vector<2x32x16xf32>
    %48 = vector.extract_strided_slice %43 {offsets = [0, 64], sizes = [64, 16], strides = [1, 1]} : vector<64x96xf32> to vector<64x16xf32>
    %49 = vector.shape_cast %48 : vector<64x16xf32> to vector<2x32x16xf32>
    %50 = arith.truncf %45 : vector<2x32x16xf32> to vector<2x32x16xbf16>
    %51 = arith.truncf %47 : vector<2x32x16xf32> to vector<2x32x16xbf16>
    "tpu.trace_start"() <{level = 10 : i32, message = "bqd,bkd->bqk"}> : () -> ()
    %cst_21 = arith.constant dense<0.000000e+00> : vector<2x32x32xf32>
    %52 = tpu.matmul %50, %51, %cst_21 {dimension_numbers = #tpu.dot_dimension_numbers<[2], [2], [1], [1], [0, 0, 0, 1, 1, 1], [0], [0]>} : vector<2x32x16xbf16>, vector<2x32x16xbf16>, vector<2x32x32xf32> -> vector<2x32x32xf32>
    "tpu.trace_stop"() : () -> ()
    %cst_22 = arith.constant 2.500000e-01 : f32
    %53 = vector.broadcast %cst_22 : f32 to vector<2x32x32xf32>
    %54 = arith.mulf %52, %53 : vector<2x32x32xf32>
    %cst_23 = arith.constant dense<0xFF800000> : vector<2x32xf32>
    %55 = vector.multi_reduction <maximumf>, %54, %cst_23 [2] : vector<2x32x32xf32> to vector<2x32xf32>
    %56 = vector.shape_cast %55 : vector<2x32xf32> to vector<2x32x1xf32>
    %57 = vector.broadcast %56 : vector<2x32x1xf32> to vector<2x32x32xf32>
    %58 = arith.subf %54, %57 : vector<2x32x32xf32>
    %59 = math.exp %58 : vector<2x32x32xf32>
    %cst_24 = arith.constant dense<0.000000e+00> : vector<2x32xf32>
    %60 = vector.multi_reduction <add>, %59, %cst_24 [2] : vector<2x32x32xf32> to vector<2x32xf32>
    %61 = vector.shape_cast %60 : vector<2x32xf32> to vector<2x32x1xf32>
    %62 = tpu.reciprocal %61 {approx = true} : vector<2x32x1xf32> -> vector<2x32x1xf32>
    %63 = vector.broadcast %62 : vector<2x32x1xf32> to vector<2x32x32xf32>
    %64 = arith.mulf %59, %63 : vector<2x32x32xf32>
    %65 = arith.truncf %64 : vector<2x32x32xf32> to vector<2x32x32xbf16>
    %66 = arith.truncf %49 : vector<2x32x16xf32> to vector<2x32x16xbf16>
    "tpu.trace_start"() <{level = 10 : i32, message = "bqk,bkd->bqd"}> : () -> ()
    %cst_25 = arith.constant dense<0.000000e+00> : vector<2x32x16xf32>
    %67 = tpu.matmul %65, %66, %cst_25 {dimension_numbers = #tpu.dot_dimension_numbers<[2], [1], [1], [2], [0, 0, 0, 1, 1, 2], [0], [0]>} : vector<2x32x32xbf16>, vector<2x32x16xbf16>, vector<2x32x16xf32> -> vector<2x32x16xf32>
    "tpu.trace_stop"() : () -> ()
    %68 = vector.shape_cast %67 : vector<2x32x16xf32> to vector<64x16xf32>
    %c88 = arith.constant 88 : index
    %c0_26 = arith.constant 0 : index
    %69 = vector.load %arg2[%c88, %c0_26] : memref<152x128xf32, #tpu.memory_space<vmem>>, vector<16x32xf32>
    %70 = arith.truncf %68 : vector<64x16xf32> to vector<64x16xbf16>
    %71 = arith.truncf %69 : vector<16x32xf32> to vector<16x32xbf16>
    %cst_27 = arith.constant dense<0.000000e+00> : vector<64x32xf32>
    %72 = tpu.matmul %70, %71, %cst_27 {dimension_numbers = #tpu.dot_dimension_numbers<[1], [0], [0], [1], [0, 0, 1, 1], [], []>} : vector<64x16xbf16>, vector<16x32xbf16>, vector<64x32xf32> -> vector<64x32xf32>
    %73 = vector.broadcast %10 : vector<1x32xf32> to vector<64x32xf32>
    %74 = arith.addf %73, %72 : vector<64x32xf32>
    %75 = vector.extract_strided_slice %43 {offsets = [0, 16], sizes = [64, 16], strides = [1, 1]} : vector<64x96xf32> to vector<64x16xf32>
    %76 = vector.shape_cast %75 : vector<64x16xf32> to vector<2x32x16xf32>
    %77 = vector.extract_strided_slice %43 {offsets = [0, 48], sizes = [64, 16], strides = [1, 1]} : vector<64x96xf32> to vector<64x16xf32>
    %78 = vector.shape_cast %77 : vector<64x16xf32> to vector<2x32x16xf32>
    %79 = vector.extract_strided_slice %43 {offsets = [0, 80], sizes = [64, 16], strides = [1, 1]} : vector<64x96xf32> to vector<64x16xf32>
    %80 = vector.shape_cast %79 : vector<64x16xf32> to vector<2x32x16xf32>
    %81 = arith.truncf %76 : vector<2x32x16xf32> to vector<2x32x16xbf16>
    %82 = arith.truncf %78 : vector<2x32x16xf32> to vector<2x32x16xbf16>
    "tpu.trace_start"() <{level = 10 : i32, message = "bqd,bkd->bqk"}> : () -> ()
    %cst_28 = arith.constant dense<0.000000e+00> : vector<2x32x32xf32>
    %83 = tpu.matmul %81, %82, %cst_28 {dimension_numbers = #tpu.dot_dimension_numbers<[2], [2], [1], [1], [0, 0, 0, 1, 1, 1], [0], [0]>} : vector<2x32x16xbf16>, vector<2x32x16xbf16>, vector<2x32x32xf32> -> vector<2x32x32xf32>
    "tpu.trace_stop"() : () -> ()
    %cst_29 = arith.constant 2.500000e-01 : f32
    %84 = vector.broadcast %cst_29 : f32 to vector<2x32x32xf32>
    %85 = arith.mulf %83, %84 : vector<2x32x32xf32>
    %cst_30 = arith.constant dense<0xFF800000> : vector<2x32xf32>
    %86 = vector.multi_reduction <maximumf>, %85, %cst_30 [2] : vector<2x32x32xf32> to vector<2x32xf32>
    %87 = vector.shape_cast %86 : vector<2x32xf32> to vector<2x32x1xf32>
    %88 = vector.broadcast %87 : vector<2x32x1xf32> to vector<2x32x32xf32>
    %89 = arith.subf %85, %88 : vector<2x32x32xf32>
    %90 = math.exp %89 : vector<2x32x32xf32>
    %cst_31 = arith.constant dense<0.000000e+00> : vector<2x32xf32>
    %91 = vector.multi_reduction <add>, %90, %cst_31 [2] : vector<2x32x32xf32> to vector<2x32xf32>
    %92 = vector.shape_cast %91 : vector<2x32xf32> to vector<2x32x1xf32>
    %93 = tpu.reciprocal %92 {approx = true} : vector<2x32x1xf32> -> vector<2x32x1xf32>
    %94 = vector.broadcast %93 : vector<2x32x1xf32> to vector<2x32x32xf32>
    %95 = arith.mulf %90, %94 : vector<2x32x32xf32>
    %96 = arith.truncf %95 : vector<2x32x32xf32> to vector<2x32x32xbf16>
    %97 = arith.truncf %80 : vector<2x32x16xf32> to vector<2x32x16xbf16>
    "tpu.trace_start"() <{level = 10 : i32, message = "bqk,bkd->bqd"}> : () -> ()
    %cst_32 = arith.constant dense<0.000000e+00> : vector<2x32x16xf32>
    %98 = tpu.matmul %96, %97, %cst_32 {dimension_numbers = #tpu.dot_dimension_numbers<[2], [1], [1], [2], [0, 0, 0, 1, 1, 2], [0], [0]>} : vector<2x32x32xbf16>, vector<2x32x16xbf16>, vector<2x32x16xf32> -> vector<2x32x16xf32>
    "tpu.trace_stop"() : () -> ()
    %99 = vector.shape_cast %98 : vector<2x32x16xf32> to vector<64x16xf32>
    %c104 = arith.constant 104 : index
    %c0_33 = arith.constant 0 : index
    %100 = vector.load %arg2[%c104, %c0_33] : memref<152x128xf32, #tpu.memory_space<vmem>>, vector<16x32xf32>
    %101 = arith.truncf %99 : vector<64x16xf32> to vector<64x16xbf16>
    %102 = arith.truncf %100 : vector<16x32xf32> to vector<16x32xbf16>
    %cst_34 = arith.constant dense<0.000000e+00> : vector<64x32xf32>
    %103 = tpu.matmul %101, %102, %cst_34 {dimension_numbers = #tpu.dot_dimension_numbers<[1], [0], [0], [1], [0, 0, 1, 1], [], []>} : vector<64x16xbf16>, vector<16x32xbf16>, vector<64x32xf32> -> vector<64x32xf32>
    %104 = arith.addf %74, %103 : vector<64x32xf32>
    %c120 = arith.constant 120 : index
    %c0_35 = arith.constant 0 : index
    %105 = vector.load %arg2[%c120, %c0_35] : memref<152x128xf32, #tpu.memory_space<vmem>>, vector<32x33xf32>
    %106 = arith.truncf %104 : vector<64x32xf32> to vector<64x32xbf16>
    %107 = arith.truncf %105 : vector<32x33xf32> to vector<32x33xbf16>
    %cst_36 = arith.constant dense<0.000000e+00> : vector<64x33xf32>
    %108 = tpu.matmul %106, %107, %cst_36 {dimension_numbers = #tpu.dot_dimension_numbers<[1], [0], [0], [1], [0, 0, 1, 1], [], []>} : vector<64x32xbf16>, vector<32x33xbf16>, vector<64x33xf32> -> vector<64x33xf32>
    %109 = vector.extract_strided_slice %108 {offsets = [0, 0], sizes = [64, 32], strides = [1, 1]} : vector<64x33xf32> to vector<64x32xf32>
    %110 = vector.broadcast %11 : vector<1x32xf32> to vector<64x32xf32>
    %111 = arith.addf %109, %110 : vector<64x32xf32>
    %112 = vector.extract_strided_slice %108 {offsets = [0, 32], sizes = [64, 1], strides = [1, 1]} : vector<64x33xf32> to vector<64x1xf32>
    %113 = vector.shape_cast %112 : vector<64x1xf32> to vector<2x32x1xf32>
    %cst_37 = arith.constant dense<0.000000e+00> : vector<2x1xf32>
    %114 = vector.multi_reduction <add>, %113, %cst_37 [1] : vector<2x32x1xf32> to vector<2x1xf32>
    %cst_38 = arith.constant 3.200000e+01 : f32
    %115 = vector.broadcast %cst_38 : f32 to vector<2x1xf32>
    %116 = arith.divf %114, %115 : vector<2x1xf32>
    %117 = vector.broadcast %12 : vector<1x1xf32> to vector<2x1xf32>
    %118 = arith.addf %116, %117 : vector<2x1xf32>
    %cst_39 = arith.constant dense<0xFF800000> : vector<64xf32>
    %119 = vector.multi_reduction <maximumf>, %19, %cst_39 [1] : vector<64x32xf32> to vector<64xf32>
    %120 = vector.shape_cast %119 : vector<64xf32> to vector<64x1xf32>
    %121 = vector.broadcast %120 : vector<64x1xf32> to vector<64x32xf32>
    %122 = arith.subf %19, %121 : vector<64x32xf32>
    %123 = vector.broadcast %120 : vector<64x1xf32> to vector<64x32xf32>
    %124 = arith.subf %19, %123 : vector<64x32xf32>
    %125 = math.exp %124 : vector<64x32xf32>
    %cst_40 = arith.constant dense<0.000000e+00> : vector<64xf32>
    %126 = vector.multi_reduction <add>, %125, %cst_40 [1] : vector<64x32xf32> to vector<64xf32>
    %127 = vector.shape_cast %126 : vector<64xf32> to vector<64x1xf32>
    %128 = math.log %127 : vector<64x1xf32>
    %129 = vector.broadcast %128 : vector<64x1xf32> to vector<64x32xf32>
    %130 = arith.subf %122, %129 : vector<64x32xf32>
    %cst_41 = arith.constant dense<0xFF800000> : vector<64xf32>
    %131 = vector.multi_reduction <maximumf>, %111, %cst_41 [1] : vector<64x32xf32> to vector<64xf32>
    %132 = vector.shape_cast %131 : vector<64xf32> to vector<64x1xf32>
    %133 = vector.broadcast %132 : vector<64x1xf32> to vector<64x32xf32>
    %134 = arith.subf %111, %133 : vector<64x32xf32>
    %135 = vector.broadcast %132 : vector<64x1xf32> to vector<64x32xf32>
    %136 = arith.subf %111, %135 : vector<64x32xf32>
    %137 = math.exp %136 : vector<64x32xf32>
    %cst_42 = arith.constant dense<0.000000e+00> : vector<64xf32>
    %138 = vector.multi_reduction <add>, %137, %cst_42 [1] : vector<64x32xf32> to vector<64xf32>
    %139 = vector.shape_cast %138 : vector<64xf32> to vector<64x1xf32>
    %140 = math.log %139 : vector<64x1xf32>
    %141 = vector.broadcast %140 : vector<64x1xf32> to vector<64x32xf32>
    %142 = arith.subf %134, %141 : vector<64x32xf32>
    %143 = math.exp %142 : vector<64x32xf32>
    %144 = arith.subf %142, %130 : vector<64x32xf32>
    %145 = arith.mulf %143, %144 : vector<64x32xf32>
    %146 = vector.shape_cast %145 : vector<64x32xf32> to vector<1x64x32xf32>
    %cst_43 = arith.constant dense<0.000000e+00> : vector<1xf32>
    %147 = vector.multi_reduction <add>, %146, %cst_43 [1, 2] : vector<1x64x32xf32> to vector<1xf32>
    %148 = vector.shape_cast %147 : vector<1xf32> to vector<1x1x1xf32>
    %149 = vector.extract %148[0, 0, 0] : f32 from vector<1x1x1xf32>
    %cst_44 = arith.constant 5.000000e-01 : f32
    %150 = arith.mulf %149, %cst_44 : f32
    %151 = vector.shape_cast %118 : vector<2x1xf32> to vector<1x2x1xf32>
    %cst_45 = arith.constant dense<0xFF800000> : vector<1xf32>
    %152 = vector.multi_reduction <maximumf>, %151, %cst_45 [1, 2] : vector<1x2x1xf32> to vector<1xf32>
    %153 = vector.shape_cast %152 : vector<1xf32> to vector<1x1x1xf32>
    %154 = vector.extract %153[0, 0, 0] : f32 from vector<1x1x1xf32>
    %155 = vector.broadcast %154 : f32 to vector<2x1xf32>
    %156 = arith.subf %118, %155 : vector<2x1xf32>
    %157 = math.exp %156 : vector<2x1xf32>
    %158 = vector.shape_cast %157 : vector<2x1xf32> to vector<1x2x1xf32>
    %cst_46 = arith.constant dense<0.000000e+00> : vector<1xf32>
    %159 = vector.multi_reduction <add>, %158, %cst_46 [1, 2] : vector<1x2x1xf32> to vector<1xf32>
    %160 = vector.shape_cast %159 : vector<1xf32> to vector<1x1x1xf32>
    %161 = vector.extract %160[0, 0, 0] : f32 from vector<1x1x1xf32>
    %162 = math.log %161 : f32
    %163 = arith.addf %162, %154 : f32
    %164 = vector.broadcast %163 : f32 to vector<2x1xf32>
    %165 = arith.subf %118, %164 : vector<2x1xf32>
    %166 = arith.mulf %4, %165 : vector<2x1xf32>
    %167 = vector.shape_cast %166 : vector<2x1xf32> to vector<1x2x1xf32>
    %cst_47 = arith.constant dense<0.000000e+00> : vector<1xf32>
    %168 = vector.multi_reduction <add>, %167, %cst_47 [1, 2] : vector<1x2x1xf32> to vector<1xf32>
    %169 = vector.shape_cast %168 : vector<1xf32> to vector<1x1x1xf32>
    %170 = vector.extract %169[0, 0, 0] : f32 from vector<1x1x1xf32>
    %cst_48 = arith.constant 0.000000e+00 : f32
    %171 = arith.subf %cst_48, %170 : f32
    %172 = arith.addf %171, %150 : f32
    %173 = tpu.iota {dimensions = array<i32: 1>} : vector<2x128xi32>
    %174 = tpu.iota {dimensions = array<i32: 0>} : vector<2x128xi32>
    %175 = arith.cmpi eq, %173, %174 : vector<2x128xi32>
    %cst_49 = arith.constant 0.000000e+00 : f32
    %176 = vector.shape_cast %118 : vector<2x1xf32> to vector<2x1xf32>
    %177 = vector.broadcast %176 : vector<2x1xf32> to vector<2x128xf32>
    %178 = vector.broadcast %cst_49 : f32 to vector<2x128xf32>
    %179 = arith.select %175, %177, %178 : vector<2x128xi1>, vector<2x128xf32>
    %cst_50 = arith.constant dense<0.000000e+00> : vector<128xf32>
    %180 = vector.multi_reduction <add>, %179, %cst_50 [0] : vector<2x128xf32> to vector<128xf32>
    %181 = vector.shape_cast %180 : vector<128xf32> to vector<1x128xf32>
    %182 = tpu.iota {dimensions = array<i32: 1>} : vector<1x128xi32>
    %c2_i32 = arith.constant 2 : i32
    %183 = vector.broadcast %c2_i32 : i32 to vector<1x128xi32>
    %184 = arith.cmpi eq, %182, %183 : vector<1x128xi32>
    %cst_51 = arith.constant 0.000000e+00 : f32
    %185 = vector.broadcast %172 : f32 to vector<1x128xf32>
    %186 = vector.broadcast %cst_51 : f32 to vector<1x128xf32>
    %187 = arith.select %184, %185, %186 : vector<1x128xi1>, vector<1x128xf32>
    %188 = arith.addf %181, %187 : vector<1x128xf32>
    %c0_52 = arith.constant 0 : index
    %c0_53 = arith.constant 0 : index
    %189 = vector.load %arg3[%c0_52, %c0_53] : memref<1x128xf32, #tpu.memory_space<vmem>>, vector<1x128xf32>
    tpu.vector_store %arg3[%c0_52, %c0_53], %188 {strides = array<i32>} : memref<1x128xf32, #tpu.memory_space<vmem>>, vector<1x128xf32>,
    return
  }
  func.func @transform_0(%arg0: i32) -> (i32, i32) {
    %c0_i32 = arith.constant 0 : i32
    %c0_i32_0 = arith.constant 0 : i32
    %c0_i32_1 = arith.constant 0 : i32
    return %c0_i32, %c0_i32_0 : i32, i32
  }
  func.func @transform_1(%arg0: i32) -> (i32, i32) {
    %c0_i32 = arith.constant 0 : i32
    %c0_i32_0 = arith.constant 0 : i32
    %c0_i32_1 = arith.constant 0 : i32
    return %c0_i32, %c0_i32_0 : i32, i32
  }
  func.func @transform_2(%arg0: i32) -> (i32, i32) {
    %c0_i32 = arith.constant 0 : i32
    %c0_i32_0 = arith.constant 0 : i32
    %c0_i32_1 = arith.constant 0 : i32
    return %c0_i32, %c0_i32_0 : i32, i32
  }
}

</mosaic_0001>

<bundles_post_ra>
// kernel: model_forward.1
= control target key start
LH: loop header
LB: loop body
LE: loop exit
PB: predicated region body
PF: predicated region fallthrough
CT: control target
= control target key end

     0   :  { %v1794_v0 = vmov 2   ;;  %v1795_v21 = vmov 1   ;;  %v1796_v22 = vmov 0   ;;  %v161_v31 = vlaneseq  ;;  %s1798_s25 = smov 16   ;;  %s1799_s28 = smov 96   ;;  %s2449_s0 = inlined_call_operand.vmem [shape: f32[64,128], index: 0, kind: input, shape index: {}]   ;;  %s2450_s1 = inlined_call_operand.vmem [shape: f32[152,128], index: 1, kind: input, shape index: {}]   ;;  %s2451_s2 = inlined_call_operand.vmem [shape: f32[1,128], index: 2, kind: output, shape index: {}]  }
   0x1   :  { %1599 = vset.pattern.permute.xlu0 %v1794_v0  ;;  %v12_v1 = vld [vmem:[%s2449_s0] sm:$0xff]  ;;  %1600 = vset.pattern.permute.xlu1 %v1794_v0  ;;  %v14_v2 = vld [vmem:[%s2449_s0 + $0x10] sm:$0xff]  ;;  %v13_v3 = vld [vmem:[%s2449_s0 + $0x8] sm:$0xff]  ;;  %v1797_v43 = vmov 0.0   ;;  %vm243_vm12 = vcmask 130048   ;;  %vm274_vm13 = vcmask 392192  }
   0x2   :  { %vm1534_vm0 = vcmp.lt.s32.totalorder %v12_v1, 0  ;;  %v1535_v4 = vceil.f32 %v12_v1  ;;  %v1536_v5 = vfloor.f32 %v12_v1  ;;  %vm1544_vm1 = vcmp.lt.s32.totalorder %v14_v2, 0  ;;  %v1838_v6 = vld [vmem:[%s2449_s0 + $0x18] sm:$0xff]  ;;  %1601 = vset.pattern.permute.xlu2 %v1795_v21  ;;  %v1850_v23 = vld [vmem:[%s2449_s0 + $0x28] sm:$0xff]  ;;  %v1860_v28 = vld [vmem:[%s2449_s0 + $0x30] sm:$0xff]  ;;  %s1800_s29 = smov 80  }
   0x3   :  { %v1545_v7 = vceil.f32 %v14_v2  ;;  %v1546_v8 = vfloor.f32 %v14_v2  ;;  %vm1539_vm2 = vcmp.lt.s32.totalorder %v13_v3, 0  ;;  %v1540_v10 = vceil.f32 %v13_v3  ;;  %104 = vperm.xlu2 %1601, %v12_v1   ;;  %v19_v34 = vld [vmem:[%s2449_s0 + $0x38] sm:$0xff]  ;;  %v16_v48 = vld [vmem:[%s2449_s0 + $0x20] sm:$0xff]  ;;  %v256_v56 = vld [vmem:[%s2450_s1 + $0x28] sm:$0xff]  ;;  %s1801_s30 = smov 64   ;;  %s1802_s3 = smov 112  }
   0x4   :  { %v1537_v9 = vsel %vm1534_vm0, %v1535_v4, %v1536_v5  ;;  %v1541_v11 = vfloor.f32 %v13_v3  ;;  %v1550_v14 = vceil.f32 %v1838_v6  ;;  %v1551_v15 = vfloor.f32 %v1838_v6  ;;  %v257_v57 = vld [vmem:[%s2450_s1 + $0x30] sm:$0xff]  ;;  %v254_v58 = vld [vmem:[%s2450_s1 + $0x18] sm:$0xff]  ;;  %v255_v60 = vld [vmem:[%s2450_s1 + $0x20] sm:$0xff]  ;;  %s1803_s8 = smov 48   ;;  %s1804_s27 = smov 32  }
   0x5   :  { %v1538_v12 = vcvt.f32.s32 %v1537_v9  ;;  %v1547_v13 = vsel %vm1544_vm1, %v1545_v7, %v1546_v8  ;;  %vm1549_vm3 = vcmp.lt.s32.totalorder %v1838_v6, 0  ;;  %vm1559_vm4 = vcmp.lt.s32.totalorder %v1850_v23, 0  ;;  %v252_v63 = vld [vmem:[%s2450_s1 + $0x8] sm:$0xff]  ;;  %v1915_v5 = vld [vmem:[%s2450_s1 + $0x2] ss:$0 sm:$0xff]  ;;  %s1807_s4 = smov 99  }
   0x6   :  { %v1548_v16 = vcvt.f32.s32 %v1547_v13  ;;  %v1542_v17 = vsel %vm1539_vm2, %v1540_v10, %v1541_v11  ;;  %v1552_v18 = vsel %vm1549_vm3, %v1550_v14, %v1551_v15  ;;  %v1560_v24 = vceil.f32 %v1850_v23  ;;  %s1808_s7 = smov 125  }
   0x7   :  { %164 = vperm.xlu0 %1599, %v1538_v12   ;;  %v1543_v19 = vcvt.f32.s32 %v1542_v17  ;;  %v1553_v20 = vcvt.f32.s32 %v1552_v18  ;;  %v1561_v25 = vfloor.f32 %v1850_v23  ;;  %vm1564_vm5 = vcmp.lt.s32.totalorder %v1860_v28, 0 }
   0x8   :  { %170 = vperm.xlu1 %1600, %v1548_v16   ;;  %v1565_v29 = vceil.f32 %v1860_v28  ;;  %v1566_v30 = vfloor.f32 %v1860_v28  ;;  %v1869_v37 = vand.u32 127, %v161_v31  ;;  %v1570_v38 = vceil.f32 %v19_v34 }
   0x9   :  { %v1562_v26 = vsel %vm1559_vm4, %v1560_v24, %v1561_v25  ;;  %v1571_v39 = vfloor.f32 %v19_v34  ;;  %vm1569_vm6 = vcmp.lt.s32.totalorder %v19_v34, 0  ;;  %v1555_v52 = vceil.f32 %v16_v48 }
   0xa   :  { %v1563_v27 = vcvt.f32.s32 %v1562_v26  ;;  %v1567_v33 = vsel %vm1564_vm5, %v1565_v29, %v1566_v30  ;;  %v1556_v53 = vfloor.f32 %v16_v48  ;;  %vm1554_vm11 = vcmp.lt.s32.totalorder %v16_v48, 0 }
   0xb   :  { %108 = vperm.xlu2 %1601, %v13_v3   ;;  %v1568_v36 = vcvt.f32.s32 %v1567_v33  ;;  %v1572_v40 = vsel %vm1569_vm6, %v1570_v38, %v1571_v39  ;;  %v273_v59 = vpack.c.bf16 %v257_v57, %v256_v56  ;;  %v272_v61 = vpack.c.bf16 %v255_v60, %v254_v58 }
   0xc   :  { %v1573_v46 = vcvt.f32.s32 %v1572_v40  ;;  %v1557_v54 = vsel %vm1554_vm11, %v1555_v52, %v1556_v53  ;;  %vm334_vm2 = vcmask 261120   ;;  %vm1097_vm3 = vcmask 269568  }
   0xd   :  { %v1558_v55 = vcvt.f32.s32 %v1557_v54  ;;  %292 = vmatpush.bf16.msra.mxu0 %v273_v59  ;;  %vm1389_vm5 = vcmask 262400   ;;  %vm1406_vm6 = vcmask 1041409  }
   0xf   :  { %167 = vperm.xlu0 %1599, %v1543_v19  }
  0x10   :  { %173 = vperm.xlu1 %1600, %v1553_v20  }
  0x11   :  { %293 = vmatpush.bf16.msra.mxu0 %v272_v61 }
  0x13   :  { %116 = vperm.xlu2 %1601, %v1838_v6  }
  0x18   :  { %1607 = vset.pattern.permute.xlu1 %v1795_v21 }
  0x19   :  { %112 = vperm.xlu1 %1607, %v14_v2  }
  0x1b   :  { %1614 = vset.pattern.permute.xlu2 %v1796_v22 }
  0x1c   :  { %44 = vperm.xlu2 %1614, %v13_v3  }
  0x21   :  { %1613 = vset.pattern.permute.xlu1 %v1796_v22 }
  0x22   :  { %39 = vperm.xlu1 %1613, %v12_v1  }
  0x24   :  { %49 = vperm.xlu2 %1614, %v14_v2  }
  0x2a   :  { %1615 = vset.pattern.permute.xlu1 %v1794_v0 }
  0x2b   :  { %179 = vperm.xlu1 %1615, %v1563_v27  }
  0x2c   :  { %1617 = vset.pattern.permute.xlu2 %v1794_v0  ;;  %v253_v0 = vld [vmem:[%s2450_s1 + $0x10] sm:$0xff] }
  0x2d   :  { %185 = vperm.xlu2 %1617, %v1573_v46   ;;  %v271_v1 = vpack.c.bf16 %v253_v0, %v252_v63 }
  0x2f   :  { %294 = vmatpush.bf16.msra.mxu0 %v271_v1 }
  0x33   :  { %182 = vperm.xlu1 %1615, %v1568_v36  }
  0x35   :  { %1619 = vset.pattern.permute.xlu2 %v1795_v21 }
  0x36   :  { %124 = vperm.xlu2 %1619, %v1850_v23  }
  0x3b   :  { %1618 = vset.pattern.permute.xlu1 %v1795_v21 }
  0x3c   :  { %120 = vperm.xlu1 %1618, %v16_v48  }
  0x3e   :  { %132 = vperm.xlu2 %1619, %v19_v34  }
  0x44   :  { %128 = vperm.xlu1 %1618, %v1860_v28  }
  0x46   :  { %1631 = vset.pattern.permute.xlu2 %v1796_v22 }
  0x47   :  { %64 = vperm.xlu2 %1631, %v1850_v23  }
  0x4c   :  { %1630 = vset.pattern.permute.xlu1 %v1796_v22 }
  0x4d   :  { %59 = vperm.xlu1 %1630, %v16_v48   ;;  %v326_v48 = vld [vmem:[%s2450_s1 + $0x48] sm:$0xff] }
  0x55   :  { %74 = vperm.xlu1 %1630, %v19_v34  }
  0x5d   :  { %v105_v62 = vpop.permute.xlu2 %104 }
  0x5e   :  { %v136_v7 = vmul.f32 %v1915_v5, %v105_v62 }
  0x65   :  { %v109_v2 = vpop.permute.xlu2 %108 }
  0x66   :  { %v137_v8 = vmul.f32 %v1915_v5, %v109_v2 }
  0x6d   :  { %v117_v4 = vpop.permute.xlu2 %116 }
  0x6e   :  { %v139_v24 = vmul.f32 %v1915_v5, %v117_v4  ;;  %v1986_v4 = vld [vmem:[%s2450_s1 + $0x4] ss:$0 sm:$0xff] }
  0x76   :  { %v45_v10 = vpop.permute.xlu2 %44 }
  0x79   :  { %v165_v32 = vpop.permute.xlu0 %164 }
  0x7a   :  { %v171_v35 = vpop.permute.xlu1 %170  ;;  %vm187_vm7 = vcmp.eq.s32.totalorder %v165_v32, %v1869_v37 }
  0x7b   :  { %v1486_v44 = vsel %vm187_vm7, 1.0, %v1797_v43  ;;  %vm189_vm9 = vcmp.eq.s32.totalorder %v171_v35, %v1869_v37  ;;  %vm1411_vm7 = vcmask 1024  }
  0x7c   :  { %v1488_v49 = vsel %vm189_vm9, 1.0, %v1797_v43  ;;  %vm1469_vm9 = vcmask 1041408  }
  0x7e   :  { %v1930_v23 = vpop.permute.xlu2 %49 }
  0x81   :  { %v168_v41 = vpop.permute.xlu0 %167 }
  0x82   :  { %vm188_vm8 = vcmp.eq.s32.totalorder %v168_v41, %v1869_v37  ;;  %v174_v42 = vpop.permute.xlu1 %173 }
  0x83   :  { %v1487_v45 = vsel %vm188_vm8, 1.0, %v1797_v43  ;;  %vm190_vm10 = vcmp.eq.s32.totalorder %v174_v42, %v1869_v37 }
  0x84   :  { %v1602_v47 = vpack.i.bf16 %v1487_v45, %v1486_v44  ;;  %v1489_v50 = vsel %vm190_vm10, 1.0, %v1797_v43  ;;  %vm1477_vm10 = vcmp.eq.s32.totalorder %v1869_v37, 2 }
  0x85   :  { %v1608_v51 = vpack.i.bf16 %v1489_v50, %v1488_v49  ;;  %v327_v49 = vld [vmem:[%s2450_s1 + $0x50] sm:$0xff] }
  0x86   :  { %1603 = vrot.lane.b32.xlu0 %v1602_v47, %s1798_s25  ;;  %v333_v50 = vpack.c.bf16 %v327_v49, %v326_v48 }
  0x87   :  { %v186_v38 = vpop.permute.xlu2 %185 }
  0x88   :  { %vm194_vm1 = vcmp.eq.s32.totalorder %v186_v38, %v1869_v37  ;;  %353 = vmatpush.bf16.msra.mxu1 %v333_v50 }
  0x89   :  { %v1493_v46 = vsel %vm194_vm1, 1.0, %v1797_v43 }
  0x8b   :  { %v113_v3 = vpop.permute.xlu1 %112 }
  0x8c   :  { %v138_v21 = vmul.f32 %v1915_v5, %v113_v3 }
  0x8e   :  { %1609 = vrot.lane.b32.xlu0 %v1608_v51, %s1798_s25  ;;  %v324_v51 = vld [vmem:[%s2450_s1 + $0x38] sm:$0xff] }
  0x90   :  { %v125_v54 = vpop.permute.xlu2 %124 }
  0x91   :  { %v141_v60 = vmul.f32 %v1915_v5, %v125_v54 }
  0x94   :  { %v40_v9 = vpop.permute.xlu1 %39 }
  0x96   :  { %176 = vperm.xlu0 %1599, %v1558_v55   ;;  %v1969_v55 = vld [vmem:[%s2450_s1 + $0x1] ss:$0 sm:$0xff] }
  0x9e   :  { %1616 = vset.pattern.permute.xlu0 %v1796_v22  ;;  %v180_v22 = vpop.permute.xlu1 %179 }
  0x9f   :  { %54 = vperm.xlu0 %1616, %v1838_v6   ;;  %v1920_v6 = vld [vmem:[%s2450_s1 + $0x3] ss:$0 sm:$0xff]  ;;  %vm192_vm14 = vcmp.eq.s32.totalorder %v180_v22, %v1869_v37 }
  0xa0   :  { %v145_v11 = vadd.f32 %v1920_v6, %v136_v7  ;;  %v146_v12 = vadd.f32 %v1920_v6, %v137_v8  ;;  %v147_v26 = vadd.f32 %v1920_v6, %v138_v21  ;;  %v148_v27 = vadd.f32 %v1920_v6, %v139_v24 }
  0xa1   :  { %v1491_v35 = vsel %vm192_vm14, 1.0, %v1797_v43  ;;  %v150_v0 = vadd.f32 %v1920_v6, %v141_v60 }
  0xa2   :  { %v153_v14 = vmax.f32 %v145_v11, 0.0  ;;  %v154_v15 = vmax.f32 %v146_v12, 0.0  ;;  %v155_v29 = vmax.f32 %v147_v26, 0.0  ;;  %v156_v33 = vmax.f32 %v148_v27, 0.0  ;;  %v133_v11 = vpop.permute.xlu2 %132 }
  0xa3   :  { %v158_v8 = vmax.f32 %v150_v0, 0.0 }
  0xa6   :  { %v183_v34 = vpop.permute.xlu1 %182 }
  0xa7   :  { %vm193_vm0 = vcmp.eq.s32.totalorder %v183_v34, %v1869_v37 }
  0xa8   :  { %v1492_v45 = vsel %vm193_vm0, 1.0, %v1797_v43 }
  0xa9   :  { %v1625_v47 = vpack.i.bf16 %v1493_v46, %v1492_v45 }
  0xae   :  { %v121_v53 = vpop.permute.xlu1 %120 }
  0xaf   :  { %v140_v59 = vmul.f32 %v1915_v5, %v121_v53 }
  0xb1   :  { %v149_v63 = vadd.f32 %v1920_v6, %v140_v59 }
  0xb3   :  { %v157_v7 = vmax.f32 %v149_v63, 0.0 }
  0xf8   :  { %v1604_v13 = vpop.permute.xlu0 %1603 }
  0xf9   :  { %v1606_v16 = vunpack.i.h.bf16 %v1604_v13  ;;  %v1605_v17 = vunpack.i.l.bf16 %v1604_v13 }
  0xfb   :  { %v244_v18 = vsel %vm243_vm12, %v153_v14, %v1605_v17  ;;  %v245_v19 = vsel %vm243_vm12, %v154_v15, %v1606_v16 }
  0xfc   :  { %v267_v20 = vpack.c.bf16 %v245_v19, %v244_v18  ;;  %v143_v19 = vmul.f32 %v1915_v5, %v133_v11 }
  0xfe   :  { %1494 = vmatmul.msk.bf16.vlgmr.msra.gmra.mxu0 %vm274_vm13, %v267_v20 }
 0x100   :  { %v1610_v25 = vpop.permute.xlu0 %1609 }
 0x101   :  { %v1612_v30 = vunpack.i.h.bf16 %v1610_v25  ;;  %v1611_v32 = vunpack.i.l.bf16 %v1610_v25 }
 0x103   :  { %v246_v39 = vsel %vm243_vm12, %v155_v29, %v1611_v32  ;;  %v247_v40 = vsel %vm243_vm12, %v156_v33, %v1612_v30  ;;  %v152_v30 = vadd.f32 %v1920_v6, %v143_v19 }
 0x104   :  { %v268_v44 = vpack.c.bf16 %v247_v40, %v246_v39 }
 0x105   :  { %v160_v38 = vmax.f32 %v152_v30, 0.0 }
 0x108   :  { %v177_v36 = vpop.permute.xlu0 %176 }
 0x109   :  { %vm191_vm15 = vcmp.eq.s32.totalorder %v177_v36, %v1869_v37 }
 0x10a   :  { %v1490_v41 = vsel %vm191_vm15, 1.0, %v1797_v43  ;;  %v325_v43 = vld [vmem:[%s2450_s1 + $0x40] sm:$0xff] }
 0x10b   :  { %v1620_v42 = vpack.i.bf16 %v1491_v35, %v1490_v41  ;;  %v332_v52 = vpack.c.bf16 %v325_v43, %v324_v51  ;;  %v65_v51 = vpop.permute.xlu2 %64 }
 0x10d   :  { %1621 = vrot.lane.b32.xlu0 %v1620_v42, %s1798_s25  ;;  %354 = vmatpush.bf16.msra.mxu1 %v332_v52 }
 0x10e   :  { %1495 = vmatmul.msk.bf16.gmra.mxu0 %vm274_vm13, %v268_v44 }
 0x111   :  { %v55_v58 = vpop.permute.xlu0 %54 }
 0x115   :  { %1626 = vrot.lane.b32.xlu0 %v1625_v47, %s1798_s25 }
 0x11d   :  { %69 = vperm.xlu0 %1616, %v1860_v28   ;;  %v1964_v28 = vld [vmem:[%s2450_s1] ss:$0 sm:$0xff] }
 0x11e   :  { %v78_v56 = vmul.f32 %v1964_v28, %v40_v9  ;;  %v79_v57 = vmul.f32 %v1964_v28, %v45_v10  ;;  %v129_v9 = vpop.permute.xlu1 %128  ;;  %v81_v22 = vmul.f32 %v1964_v28, %v55_v58  ;;  %v80_v26 = vmul.f32 %v1964_v28, %v1930_v23 }
 0x11f   :  { %v142_v18 = vmul.f32 %v1915_v5, %v129_v9  ;;  %v83_v52 = vmul.f32 %v1964_v28, %v65_v51 }
 0x120   :  { %v87_v61 = vadd.f32 %v1969_v55, %v78_v56  ;;  %v88_v62 = vadd.f32 %v1969_v55, %v79_v57  ;;  %v90_v32 = vadd.f32 %v1969_v55, %v81_v22  ;;  %v89_v5 = vadd.f32 %v1969_v55, %v80_v26 }
 0x121   :  { %v151_v29 = vadd.f32 %v1920_v6, %v142_v18  ;;  %v92_v54 = vadd.f32 %v1969_v55, %v83_v52 }
 0x122   :  { %v1979_v2 = vmax.f32 %v87_v61, 0.0  ;;  %v1981_v3 = vmax.f32 %v88_v62, 0.0  ;;  %v2005_v39 = vmax.f32 %v90_v32, 0.0  ;;  %v2007_v40 = vmax.f32 %v89_v5, 0.0 }
 0x123   :  { %v159_v36 = vmax.f32 %v151_v29, 0.0  ;;  %v2023_v58 = vmax.f32 %v92_v54, 0.0 }
 0x124   :  { %v259_v14 = vadd.f32 %v1986_v4, %v1979_v2  ;;  %v260_v15 = vadd.f32 %v1986_v4, %v1981_v3  ;;  %v262_v42 = vadd.f32 %v1986_v4, %v2005_v39  ;;  %v261_v45 = vadd.f32 %v1986_v4, %v2007_v40 }
 0x125   :  { %v264_v61 = vadd.f32 %v1986_v4, %v2023_v58 }
 0x126   :  { %v60_v50 = vpop.permute.xlu1 %59 }
 0x127   :  { %v82_v43 = vmul.f32 %v1964_v28, %v60_v50 }
 0x129   :  { %v91_v53 = vadd.f32 %v1969_v55, %v82_v43 }
 0x12b   :  { %v2021_v57 = vmax.f32 %v91_v53, 0.0 }
 0x12d   :  { %v263_v60 = vadd.f32 %v1986_v4, %v2021_v57 }
 0x12e   :  { %v75_v62 = vpop.permute.xlu1 %74 }
 0x17b   :  { %v296_v1 = vpop.f32.mrf.mxu0 }
 0x17c   :  { %v316_v24 = vadd.f32 %v296_v1, %v259_v14 }
 0x17f   :  { %v1622_v10 = vpop.permute.xlu0 %1621 }
 0x180   :  { %v1624_v12 = vunpack.i.h.bf16 %v1622_v10  ;;  %v1623_v13 = vunpack.i.l.bf16 %v1622_v10 }
 0x182   :  { %v248_v16 = vsel %vm243_vm12, %v157_v7, %v1623_v13  ;;  %v249_v17 = vsel %vm243_vm12, %v158_v8, %v1624_v12  ;;  %v85_v8 = vmul.f32 %v1964_v28, %v75_v62 }
 0x183   :  { %v298_v20 = vpop.f32.mrf.mxu0  ;;  %v269_v21 = vpack.c.bf16 %v249_v17, %v248_v16 }
 0x184   :  { %v317_v25 = vadd.f32 %v298_v20, %v260_v15  ;;  %v94_v14 = vadd.f32 %v1969_v55, %v85_v8 }
 0x185   :  { %1496 = vmatmul.msk.bf16.gmra.mxu0 %vm274_vm13, %v269_v21 }
 0x186   :  { %v328_v27 = vpack.c.bf16 %v317_v25, %v316_v24  ;;  %v2036_v20 = vmax.f32 %v94_v14, 0.0 }
 0x187   :  { %v1627_v33 = vpop.permute.xlu0 %1626 }
 0x188   :  { %1498 = vmatmul.msk.bf16.vlgmr.msra.gmra.mxu1 %vm334_vm2, %v328_v27  ;;  %v1629_v34 = vunpack.i.h.bf16 %v1627_v33  ;;  %v1628_v35 = vunpack.i.l.bf16 %v1627_v33  ;;  %v266_v22 = vadd.f32 %v1986_v4, %v2036_v20 }
 0x18a   :  { %v250_v41 = vsel %vm243_vm12, %v159_v36, %v1628_v35  ;;  %v251_v6 = vsel %vm243_vm12, %v160_v38, %v1629_v34 }
 0x18b   :  { %v301_v23 = vpop.f32.mrf.mxu0  ;;  %v270_v44 = vpack.c.bf16 %v251_v6, %v250_v41 }
 0x18c   :  { %v318_v47 = vadd.f32 %v301_v23, %v261_v45 }
 0x18f   :  { %v70_v63 = vpop.permute.xlu0 %69 }
 0x190   :  { %v84_v10 = vmul.f32 %v1964_v28, %v70_v63 }
 0x192   :  { %v93_v17 = vadd.f32 %v1969_v55, %v84_v10 }
 0x193   :  { %v303_v46 = vpop.f32.mrf.mxu0 }
 0x194   :  { %v319_v48 = vadd.f32 %v303_v46, %v262_v42  ;;  %v2040_v28 = vmax.f32 %v93_v17, 0.0 }
 0x195   :  { %1497 = vmatmul.msk.bf16.gmra.mxu0 %vm274_vm13, %v270_v44 }
 0x196   :  { %v329_v49 = vpack.c.bf16 %v319_v48, %v318_v47  ;;  %v265_v24 = vadd.f32 %v1986_v4, %v2040_v28 }
 0x198   :  { %1499 = vmatmul.msk.bf16.gmra.mxu1 %vm334_vm2, %v329_v49 }
 0x202   :  { %v306_v56 = vpop.f32.mrf.mxu0 }
 0x203   :  { %v320_v1 = vadd.f32 %v306_v56, %v263_v60 }
 0x205   :  { %v356_v59 = vpop.f32.mrf.mxu1 }
 0x206   :  { %v376_v9 = vpack.c.bf16 %v356_v59, %v356_v59 }
 0x208   :  { %v388_v15 = vunpack.c.l.b16 %v376_v9 }
 0x20a   :  { %v308_v0 = vpop.f32.mrf.mxu0 }
 0x20b   :  { %v321_v7 = vadd.f32 %v308_v0, %v264_v61 }
 0x20d   :  { %v330_v11 = vpack.c.bf16 %v321_v7, %v320_v1  ;;  %v358_v12 = vpop.f32.mrf.mxu1 }
 0x20e   :  { %v377_v13 = vpack.c.bf16 %v358_v12, %v358_v12 }
 0x20f   :  { %1500 = vmatmul.msk.bf16.gmra.mxu1 %vm334_vm2, %v330_v11 }
 0x210   :  { %v389_v16 = vunpack.c.l.b16 %v377_v13 }
 0x212   :  { %v2034_v18 = vpack.c.b16 %v389_v16, %v388_v15  ;;  %v311_v19 = vpop.f32.mrf.mxu0 }
 0x213   :  { %v322_v55 = vadd.f32 %v311_v19, %v265_v24 }
 0x214   :  { %394 = vrot.lane.b32.xlu0 %v2034_v18, %s1799_s28 }
 0x215   :  { %v361_v21 = vpop.f32.mrf.mxu1 }
 0x216   :  { %v378_v27 = vpack.c.bf16 %v361_v21, %v361_v21 }
 0x218   :  { %v390_v5 = vunpack.c.l.b16 %v378_v27 }
 0x21a   :  { %v313_v25 = vpop.f32.mrf.mxu0 }
 0x21b   :  { %v323_v26 = vadd.f32 %v313_v25, %v266_v22 }
 0x21d   :  { %v331_v29 = vpack.c.bf16 %v323_v26, %v322_v55  ;;  %v363_v30 = vpop.f32.mrf.mxu1 }
 0x21e   :  { %v379_v32 = vpack.c.bf16 %v363_v30, %v363_v30 }
 0x21f   :  { %1501 = vmatmul.msk.bf16.gmra.mxu1 %vm334_vm2, %v331_v29 }
 0x220   :  { %v391_v33 = vunpack.c.l.b16 %v379_v32 }
 0x222   :  { %v2047_v34 = vpack.c.b16 %v391_v33, %v390_v5 }
 0x224   :  { %723 = vrot.lane.b32.xlu0 %v2047_v34, %s1800_s29  ;;  %396 = vrot.lane.b32.xlu2 %v2047_v34, %s1799_s28 }
 0x27e   :  { %v397_v4 = vpop.permute.xlu2 %396 }
 0x27f   :  { %v408_v35 = vsel %vm243_vm12, %v397_v4, 0 }
 0x280   :  { %416 = vmatpush.bf16.xpose.msrb.mxu1 %v408_v35  ;;  %1530 = vmatpush.bf16.xpose.msra.mxu2 %v408_v35 }
 0x286   :  { %v395_v36 = vpop.permute.xlu0 %394 }
 0x287   :  { %v405_v38 = vsel %vm243_vm12, %v395_v36, 0 }
 0x288   :  { %417 = vmatpush.bf16.xpose.msrb.mxu1 %v405_v38  ;;  %1531 = vmatpush.bf16.xpose.msra.mxu2 %v405_v38 }
 0x28c   :  { %v366_v23 = vpop.f32.mrf.mxu1 }
 0x28d   :  { %v380_v41 = vpack.c.bf16 %v366_v23, %v366_v23 }
 0x28f   :  { %1502 = vmatmul.msk.bf16.vlgmr.msrb.gmra.mxu1 %vm243_vm12, %v2034_v18  ;;  %1503 = vmatmul.msk.bf16.vlgmr.msra.gmra.mxu2 %vm243_vm12, %v2047_v34  ;;  %v433_v44 = vunpack.c.l.b16 %v380_v41 }
 0x294   :  { %v368_v6 = vpop.f32.mrf.mxu1 }
 0x295   :  { %v381_v42 = vpack.c.bf16 %v368_v6, %v368_v6 }
 0x296   :  { %v724_v12 = vpop.permute.xlu0 %723 }
 0x297   :  { %v434_v45 = vunpack.c.l.b16 %v381_v42  ;;  %v735_v14 = vsel %vm243_vm12, %v724_v12, 0 }
 0x299   :  { %v2059_v46 = vpack.c.b16 %v434_v45, %v433_v44 }
 0x29b   :  { %439 = vrot.lane.b32.xlu2 %v2059_v46, %s1799_s28 }
 0x29c   :  { %v371_v47 = vpop.f32.mrf.mxu1 }
 0x29d   :  { %v382_v48 = vpack.c.bf16 %v371_v47, %v371_v47 }
 0x29f   :  { %v435_v51 = vunpack.c.l.b16 %v382_v48 }
 0x2a4   :  { %v373_v49 = vpop.f32.mrf.mxu1 }
 0x2a5   :  { %v383_v50 = vpack.c.bf16 %v373_v49, %v373_v49 }
 0x2a7   :  { %v436_v43 = vunpack.c.l.b16 %v383_v50 }
 0x2a9   :  { %v2063_v52 = vpack.c.b16 %v436_v43, %v435_v51 }
 0x2ab   :  { %441 = vrot.lane.b32.xlu1 %v2063_v52, %s1799_s28 }
 0x2f5   :  { %v440_v11 = vpop.permute.xlu2 %439 }
 0x2f6   :  { %v450_v13 = vsel %vm243_vm12, %v440_v11, 0 }
 0x30c   :  { %v419_v53 = vpop.f32.mrf.mxu1 }
 0x30d   :  { %v474_v54 = vmul.f32 0.25, %v419_v53 }
 0x30f   :  { %v482_v56 = vsel %vm334_vm2, %v474_v54, -inf }
 0x310   :  { %483 = vmax.xlane.f32.xlu1 %v482_v56 }
 0x312   :  { %v424_v59 = vpop.f32.mrf.mxu2 }
 0x313   :  { %v476_v60 = vmul.f32 0.25, %v424_v59 }
 0x314   :  { %v421_v61 = vpop.f32.mrf.mxu1 }
 0x315   :  { %v475_v62 = vmul.f32 0.25, %v421_v61  ;;  %v488_v63 = vsel %vm334_vm2, %v476_v60, -inf }
 0x316   :  { %489 = vmax.xlane.f32.xlu0 %v488_v63 }
 0x317   :  { %v485_v0 = vsel %vm334_vm2, %v475_v62, -inf }
 0x318   :  { %486 = vmax.xlane.f32.xlu2 %v485_v0 }
 0x31a   :  { %v426_v1 = vpop.f32.mrf.mxu2 }
 0x31b   :  { %v477_v7 = vmul.f32 0.25, %v426_v1 }
 0x31d   :  { %v442_v8 = vpop.permute.xlu1 %441  ;;  %v491_v10 = vsel %vm334_vm2, %v477_v7, -inf }
 0x31e   :  { %v453_v9 = vsel %vm243_vm12, %v442_v8, 0 }
 0x31f   :  { %461 = vmatpush.bf16.xpose.msrb.mxu0 %v453_v9  ;;  %1532 = vmatpush.bf16.xpose.msra.mxu3 %v453_v9 }
 0x320   :  { %492 = vmax.xlane.f32.xlu2 %v491_v10 }
 0x327   :  { %462 = vmatpush.bf16.xpose.msrb.mxu0 %v450_v13  ;;  %1533 = vmatpush.bf16.xpose.msra.mxu3 %v450_v13 }
 0x329   :  { %721 = vrot.lane.b32.xlu1 %v2034_v18, %s1800_s29 }
 0x32e   :  { %1504 = vmatmul.msk.bf16.vlgmr.msrb.gmra.mxu0 %vm243_vm12, %v2059_v46  ;;  %1505 = vmatmul.msk.bf16.vlgmr.msra.gmra.mxu3 %vm243_vm12, %v2063_v52 }
 0x32f   :  { %743 = vmatpush.bf16.xpose.msra.mxu0 %v735_v14 }
 0x331   :  { %588 = vrot.lane.b32.xlu1 %v2034_v18, %s1801_s30 }
 0x338   :  { %590 = vrot.lane.b32.xlu2 %v2047_v34, %s1801_s30 }
 0x383   :  { %v484_v15 = vpop.xlane.xlu1 %483 }
 0x384   :  { %v506_v16 = vsub.f32 %v474_v54, %v484_v15 }
 0x386   :  { %v514_v17 = vmul.f32 1.442695, %v506_v16 }
 0x388   :  { %1642 = vpow2.f32 %v514_v17 }
 0x389   :  { %v490_v19 = vpop.xlane.xlu0 %489 }
 0x38a   :  { %v508_v21 = vsub.f32 %v476_v60, %v490_v19 }
 0x38b   :  { %v487_v22 = vpop.xlane.xlu2 %486 }
 0x38c   :  { %v518_v24 = vmul.f32 1.442695, %v508_v21  ;;  %v507_v25 = vsub.f32 %v475_v62, %v487_v22 }
 0x38e   :  { %v1643_v55 = vpop.eup %1642  ;;  %1644 = vpow2.f32 %v518_v24  ;;  %v516_v26 = vmul.f32 1.442695, %v507_v25 }
 0x38f   :  { %v530_v27 = vsel %vm334_vm2, %v1643_v55, 0.0 }
 0x390   :  { %1646 = vpow2.f32 %v516_v26  ;;  %531 = vadd.xlane.f32.xlu0 %v530_v27 }
 0x393   :  { %v493_v29 = vpop.xlane.xlu2 %492 }
 0x394   :  { %v2085_v30 = vpop.eup %1644  ;;  %v509_v32 = vsub.f32 %v477_v7, %v493_v29 }
 0x395   :  { %v536_v5 = vsel %vm334_vm2, %v2085_v30, 0.0 }
 0x396   :  { %v1647_v33 = vpop.eup %1646  ;;  %v520_v4 = vmul.f32 1.442695, %v509_v32  ;;  %537 = vadd.xlane.f32.xlu2 %v536_v5 }
 0x397   :  { %v533_v35 = vsel %vm334_vm2, %v1647_v33, 0.0 }
 0x398   :  { %1648 = vpow2.f32 %v520_v4  ;;  %534 = vadd.xlane.f32.xlu0 %v533_v35 }
 0x39b   :  { %v591_v36 = vpop.permute.xlu2 %590  ;;  %v722_v38 = vpop.permute.xlu1 %721 }
 0x39c   :  { %v732_v23 = vsel %vm243_vm12, %v722_v38, 0  ;;  %606 = vmatpush.bf16.msrb.mxu2 %v591_v36 }
 0x39d   :  { %744 = vmatpush.bf16.xpose.msra.mxu0 %v732_v23 }
 0x39e   :  { %v1649_v41 = vpop.eup %1648 }
 0x39f   :  { %v539_v6 = vsel %vm334_vm2, %v1649_v41, 0.0 }
 0x3a0   :  { %540 = vadd.xlane.f32.xlu1 %v539_v6 }
 0x3a3   :  { %v589_v42 = vpop.permute.xlu1 %588 }
 0x3a4   :  { %607 = vmatpush.bf16.msrb.mxu2 %v589_v42  ;;  %v660_v42 = vld [vmem:[%s2450_s1 + $0x58] sm:$0xff] }
 0x3ab   :  { %v464_v44 = vpop.f32.mrf.mxu0 }
 0x3ac   :  { %v478_v45 = vmul.f32 0.25, %v464_v44  ;;  %717 = vrot.lane.b32.xlu0 %v2034_v18, %s1802_s3  ;;  %v661_v44 = vld [vmem:[%s2450_s1 + $0x60] sm:$0xff] }
 0x3ae   :  { %758 = vrot.lane.b32.xlu2 %v2063_v52, %s1802_s3  ;;  %v494_v47 = vsel %vm334_vm2, %v478_v45, -inf }
 0x3af   :  { %495 = vmax.xlane.f32.xlu1 %v494_v47 }
 0x3b1   :  { %v469_v48 = vpop.f32.mrf.mxu3 }
 0x3b2   :  { %v2095_v49 = vmul.f32 0.25, %v469_v48 }
 0x3b3   :  { %v466_v54 = vpop.f32.mrf.mxu0 }
 0x3b4   :  { %719 = vrot.lane.b32.xlu0 %v2047_v34, %s1802_s3  ;;  %v500_v50 = vsel %vm334_vm2, %v2095_v49, -inf  ;;  %v2109_v56 = vmul.f32 0.25, %v466_v54 }
 0x3b6   :  { %v497_v59 = vsel %vm334_vm2, %v2109_v56, -inf }
 0x3b7   :  { %501 = vmax.xlane.f32.xlu1 %v500_v50 }
 0x3b9   :  { %v471_v51 = vpop.f32.mrf.mxu3 }
 0x3ba   :  { %v2100_v43 = vmul.f32 0.25, %v471_v51 }
 0x3bc   :  { %762 = vrot.lane.b32.xlu0 %v2063_v52, %s1800_s29  ;;  %v503_v53 = vsel %vm334_vm2, %v2100_v43, -inf }
 0x3bf   :  { %504 = vmax.xlane.f32.xlu1 %v503_v53 }
 0x3c4   :  { %760 = vrot.lane.b32.xlu0 %v2059_v46, %s1800_s29 }
 0x3cc   :  { %756 = vrot.lane.b32.xlu0 %v2059_v46, %s1802_s3 }
 0x3f6   :  { %498 = vmax.xlane.f32.xlu0 %v497_v59 }
 0x403   :  { %v532_v60 = vpop.xlane.xlu0 %531 }
 0x404   :  { %1650 = vrcp.f32 %v532_v60 }
 0x409   :  { %v538_v7 = vpop.xlane.xlu2 %537 }
 0x40a   :  { %631 = vrot.lane.b32.xlu0 %v2063_v52, %s1801_s30  ;;  %v1651_v62 = vpop.eup %1650 }
 0x40b   :  { %v535_v61 = vpop.xlane.xlu0 %534  ;;  %v562_v63 = vmul.f32 %v1651_v62, %v1643_v55 }
 0x40c   :  { %1652 = vrcp.f32 %v535_v61 }
 0x40d   :  { %v570_v1 = vpack.c.bf16 %v562_v63, %v562_v63 }
 0x40f   :  { %v582_v11 = vunpack.c.l.b16 %v570_v1 }
 0x411   :  { %v759_v23 = vpop.permute.xlu2 %758 }
 0x412   :  { %v1653_v0 = vpop.eup %1652 }
 0x413   :  { %v563_v8 = vmul.f32 %v1653_v0, %v1647_v33  ;;  %v541_v9 = vpop.xlane.xlu1 %540 }
 0x414   :  { %1654 = vrcp.f32 %v541_v9 }
 0x415   :  { %v571_v10 = vpack.c.bf16 %v563_v8, %v563_v8  ;;  %1656 = vrcp.f32 %v538_v7 }
 0x417   :  { %v583_v12 = vunpack.c.l.b16 %v571_v10 }
 0x419   :  { %v586_v13 = vpack.c.b16 %v583_v12, %v582_v11 }
 0x41a   :  { %v1655_v14 = vpop.eup %1654 }
 0x41b   :  { %1506 = vmatmul.msk.bf16.vlgmr.msrb.gmra.mxu2 %vm334_vm2, %v586_v13  ;;  %v1657_v15 = vpop.eup %1656  ;;  %v565_v16 = vmul.f32 %v1655_v14, %v1649_v41 }
 0x41c   :  { %v564_v19 = vmul.f32 %v1657_v15, %v2085_v30 }
 0x41d   :  { %v573_v21 = vpack.c.bf16 %v565_v16, %v565_v16 }
 0x41e   :  { %v718_v17 = vpop.permute.xlu0 %717  ;;  %v572_v25 = vpack.c.bf16 %v564_v19, %v564_v19 }
 0x41f   :  { %1514 = vmatmul.msk.bf16.vlgmr.msra.gmra.mxu0 %vm243_vm12, %v718_v17  ;;  %v585_v55 = vunpack.c.l.b16 %v573_v21 }
 0x420   :  { %v584_v29 = vunpack.c.l.b16 %v572_v25 }
 0x422   :  { %v496_v22 = vpop.xlane.xlu1 %495  ;;  %v587_v32 = vpack.c.b16 %v585_v55, %v584_v29 }
 0x423   :  { %v510_v24 = vsub.f32 %v478_v45, %v496_v22  ;;  %v666_v45 = vpack.c.bf16 %v661_v44, %v660_v42 }
 0x425   :  { %v522_v26 = vmul.f32 1.442695, %v510_v24  ;;  %686 = vmatpush.bf16.msra.mxu1 %v666_v45 }
 0x426   :  { %v720_v27 = vpop.permute.xlu0 %719 }
 0x427   :  { %1658 = vpow2.f32 %v522_v26 }
 0x42a   :  { %v502_v47 = vpop.xlane.xlu1 %501 }
 0x42b   :  { %1507 = vmatmul.msk.bf16.gmra.mxu2 %vm334_vm2, %v587_v32  ;;  %v512_v48 = vsub.f32 %v2095_v49, %v502_v47 }
 0x42d   :  { %v2121_v4 = vpop.eup %1658  ;;  %v526_v50 = vmul.f32 1.442695, %v512_v48 }
 0x42e   :  { %v763_v5 = vpop.permute.xlu0 %762  ;;  %v542_v30 = vsel %vm334_vm2, %v2121_v4, 0.0 }
 0x42f   :  { %v774_v33 = vsel %vm243_vm12, %v763_v5, 0  ;;  %1515 = vmatmul.msk.bf16.gmra.mxu0 %vm243_vm12, %v720_v27  ;;  %1660 = vpow2.f32 %v526_v50 }
 0x430   :  { %782 = vmatpush.bf16.xpose.msra.mxu2 %v774_v33 }
 0x432   :  { %v505_v51 = vpop.xlane.xlu1 %504 }
 0x433   :  { %v513_v59 = vsub.f32 %v2100_v43, %v505_v51 }
 0x434   :  { %543 = vadd.xlane.f32.xlu0 %v542_v30 }
 0x435   :  { %v528_v62 = vmul.f32 1.442695, %v513_v59  ;;  %v2137_v63 = vpop.eup %1660 }
 0x436   :  { %v761_v35 = vpop.permute.xlu0 %760  ;;  %v548_v9 = vsel %vm334_vm2, %v2137_v63, 0.0 }
 0x437   :  { %v771_v36 = vsel %vm243_vm12, %v761_v35, 0  ;;  %1662 = vpow2.f32 %v528_v62 }
 0x438   :  { %783 = vmatpush.bf16.xpose.msra.mxu2 %v771_v36 }
 0x43d   :  { %v2143_v43 = vpop.eup %1662 }
 0x43e   :  { %v757_v38 = vpop.permute.xlu0 %756  ;;  %v551_v14 = vsel %vm334_vm2, %v2143_v43, 0.0 }
 0x43f   :  { %1516 = vmatmul.msk.bf16.vlgmr.msra.gmra.mxu2 %vm243_vm12, %v757_v38 }
 0x44f   :  { %1517 = vmatmul.msk.bf16.gmra.mxu2 %vm243_vm12, %v759_v23 }
 0x469   :  { %v499_v41 = vpop.xlane.xlu0 %498 }
 0x46a   :  { %v511_v55 = vsub.f32 %v2109_v56, %v499_v41 }
 0x46c   :  { %v524_v26 = vmul.f32 1.442695, %v511_v55 }
 0x46e   :  { %1664 = vpow2.f32 %v524_v26 }
 0x474   :  { %v2156_v27 = vpop.eup %1664 }
 0x475   :  { %v545_v29 = vsel %vm334_vm2, %v2156_v27, 0.0 }
 0x47c   :  { %v632_v6 = vpop.permute.xlu0 %631 }
 0x47d   :  { %647 = vmatpush.bf16.msrb.mxu3 %v632_v6 }
 0x49c   :  { %v746_v53 = vpop.f32.mrf.mxu0 }
 0x49d   :  { %v795_v54 = vmul.f32 0.25, %v746_v53 }
 0x49e   :  { %v609_v60 = vpop.f32.mrf.mxu2 }
 0x49f   :  { %v803_v61 = vsel %vm334_vm2, %v795_v54, -inf }
 0x4a0   :  { %804 = vmax.xlane.f32.xlu2 %v803_v61 }
 0x4a4   :  { %v748_v0 = vpop.f32.mrf.mxu0 }
 0x4a5   :  { %v796_v1 = vmul.f32 0.25, %v748_v0 }
 0x4a6   :  { %v611_v7 = vpop.f32.mrf.mxu2 }
 0x4a7   :  { %v662_v8 = vpack.c.bf16 %v611_v7, %v609_v60  ;;  %v806_v49 = vsel %vm334_vm2, %v796_v1, -inf  ;;  %v544_v60 = vpop.xlane.xlu0 %543 }
 0x4a8   :  { %807 = vmax.xlane.f32.xlu1 %v806_v49  ;;  %549 = vadd.xlane.f32.xlu2 %v548_v9 }
 0x4a9   :  { %1510 = vmatmul.msk.bf16.vlgmr.msra.gmra.mxu1 %vm243_vm12, %v662_v8 }
 0x4ac   :  { %v751_v10 = vpop.f32.mrf.mxu0 }
 0x4ad   :  { %v797_v11 = vmul.f32 0.25, %v751_v10 }
 0x4ae   :  { %v614_v12 = vpop.f32.mrf.mxu2 }
 0x4af   :  { %v809_v13 = vsel %vm334_vm2, %v797_v11, -inf }
 0x4b0   :  { %810 = vmax.xlane.f32.xlu1 %v809_v13  ;;  %552 = vadd.xlane.f32.xlu2 %v551_v14 }
 0x4b4   :  { %v753_v15 = vpop.f32.mrf.mxu0 }
 0x4b5   :  { %v798_v16 = vmul.f32 0.25, %v753_v15 }
 0x4b6   :  { %v616_v17 = vpop.f32.mrf.mxu2 }
 0x4b7   :  { %v663_v19 = vpack.c.bf16 %v616_v17, %v614_v12  ;;  %v812_v21 = vsel %vm334_vm2, %v798_v16, -inf }
 0x4b8   :  { %813 = vmax.xlane.f32.xlu1 %v812_v21 }
 0x4b9   :  { %1511 = vmatmul.msk.bf16.gmra.mxu1 %vm243_vm12, %v663_v19 }
 0x4c2   :  { %v785_v22 = vpop.f32.mrf.mxu2 }
 0x4c3   :  { %v799_v24 = vmul.f32 0.25, %v785_v22 }
 0x4c5   :  { %v815_v25 = vsel %vm334_vm2, %v799_v24, -inf }
 0x4c6   :  { %816 = vmax.xlane.f32.xlu0 %v815_v25 }
 0x4ca   :  { %v787_v23 = vpop.f32.mrf.mxu2 }
 0x4cb   :  { %v2168_v45 = vmul.f32 0.25, %v787_v23 }
 0x4d1   :  { %629 = vrot.lane.b32.xlu1 %v2059_v46, %s1801_s30 }
 0x4d2   :  { %v790_v51 = vpop.f32.mrf.mxu2 }
 0x4d3   :  { %v801_v61 = vmul.f32 0.25, %v790_v51 }
 0x4d5   :  { %v821_v0 = vsel %vm334_vm2, %v801_v61, -inf }
 0x4da   :  { %909 = vrot.lane.b32.xlu0 %v2034_v18, %s1803_s8  ;;  %v792_v7 = vpop.f32.mrf.mxu2 }
 0x4db   :  { %v802_v9 = vmul.f32 0.25, %v792_v7 }
 0x4fb   :  { %546 = vadd.xlane.f32.xlu1 %v545_v29 }
 0x513   :  { %v805_v32 = vpop.xlane.xlu2 %804 }
 0x514   :  { %v827_v5 = vsub.f32 %v795_v54, %v805_v32  ;;  %v818_v54 = vsel %vm334_vm2, %v2168_v45, -inf }
 0x516   :  { %v835_v33 = vmul.f32 1.442695, %v827_v5 }
 0x518   :  { %1666 = vpow2.f32 %v835_v33 }
 0x51b   :  { %v808_v30 = vpop.xlane.xlu1 %807  ;;  %v550_v15 = vpop.xlane.xlu2 %549 }
 0x51c   :  { %v828_v35 = vsub.f32 %v796_v1, %v808_v30 }
 0x51e   :  { %v2160_v36 = vpop.eup %1666  ;;  %v837_v38 = vmul.f32 1.442695, %v828_v35 }
 0x51f   :  { %v851_v18 = vsel %vm334_vm2, %v2160_v36, 0.0 }
 0x520   :  { %1668 = vpow2.f32 %v837_v38  ;;  %852 = vadd.xlane.f32.xlu1 %v851_v18 }
 0x523   :  { %v811_v56 = vpop.xlane.xlu1 %810  ;;  %v553_v21 = vpop.xlane.xlu2 %552 }
 0x524   :  { %v829_v41 = vsub.f32 %v797_v11, %v811_v56  ;;  %v824_v11 = vsel %vm334_vm2, %v802_v9, -inf }
 0x526   :  { %v2164_v6 = vpop.eup %1668  ;;  %v839_v42 = vmul.f32 1.442695, %v829_v41 }
 0x527   :  { %v854_v44 = vsel %vm334_vm2, %v2164_v6, 0.0 }
 0x528   :  { %1670 = vpow2.f32 %v839_v42  ;;  %855 = vadd.xlane.f32.xlu2 %v854_v44 }
 0x52b   :  { %v814_v47 = vpop.xlane.xlu1 %813 }
 0x52c   :  { %v830_v48 = vsub.f32 %v798_v16, %v814_v47 }
 0x52e   :  { %v2170_v50 = vpop.eup %1670  ;;  %v841_v53 = vmul.f32 1.442695, %v830_v48 }
 0x52f   :  { %v857_v59 = vsel %vm334_vm2, %v2170_v50, 0.0 }
 0x530   :  { %1672 = vpow2.f32 %v841_v53  ;;  %819 = vmax.xlane.f32.xlu2 %v818_v54  ;;  %858 = vadd.xlane.f32.xlu1 %v857_v59 }
 0x536   :  { %v2176_v62 = vpop.eup %1672 }
 0x537   :  { %v860_v1 = vsel %vm334_vm2, %v2176_v62, 0.0 }
 0x538   :  { %822 = vmax.xlane.f32.xlu2 %v821_v0  ;;  %861 = vadd.xlane.f32.xlu1 %v860_v1  ;;  %v1143_v0 = vsel %vm334_vm2, %v1981_v3, -inf }
 0x539   :  { %v817_v8 = vpop.xlane.xlu0 %816 }
 0x53a   :  { %v831_v49 = vsub.f32 %v799_v24, %v817_v8 }
 0x53c   :  { %v843_v10 = vmul.f32 1.442695, %v831_v49 }
 0x53e   :  { %1674 = vpow2.f32 %v843_v10 }
 0x53f   :  { %1676 = vrcp.f32 %v544_v60 }
 0x540   :  { %825 = vmax.xlane.f32.xlu2 %v824_v11 }
 0x543   :  { %v630_v12 = vpop.permute.xlu1 %629 }
 0x544   :  { %v2182_v13 = vpop.eup %1674  ;;  %648 = vmatpush.bf16.msrb.mxu3 %v630_v12  ;;  %v1146_v12 = vsel %vm334_vm2, %v2007_v40, -inf }
 0x545   :  { %v863_v14 = vsel %vm334_vm2, %v2182_v13, 0.0  ;;  %v1677_v17 = vpop.eup %1676 }
 0x546   :  { %864 = vadd.xlane.f32.xlu0 %v863_v14  ;;  %v566_v19 = vmul.f32 %v1677_v17, %v2121_v4 }
 0x548   :  { %v574_v24 = vpack.c.bf16 %v566_v19, %v566_v19 }
 0x54a   :  { %v623_v55 = vunpack.c.l.b16 %v574_v24  ;;  %v1140_v24 = vsel %vm334_vm2, %v1979_v2, -inf }
 0x551   :  { %952 = vrot.lane.b32.xlu1 %v2063_v52, %s1803_s8 }
 0x558   :  { %911 = vrot.lane.b32.xlu2 %v2047_v34, %s1803_s8 }
 0x559   :  { %950 = vrot.lane.b32.xlu1 %v2059_v46, %s1803_s8 }
 0x56e   :  { %v547_v16 = vpop.xlane.xlu1 %546 }
 0x56f   :  { %1678 = vrcp.f32 %v547_v16 }
 0x570   :  { %1680 = vrcp.f32 %v553_v21 }
 0x571   :  { %1682 = vrcp.f32 %v550_v15 }
 0x575   :  { %v1679_v22 = vpop.eup %1678 }
 0x576   :  { %v567_v25 = vmul.f32 %v1679_v22, %v2156_v27  ;;  %v1681_v29 = vpop.eup %1680 }
 0x577   :  { %v1683_v46 = vpop.eup %1682  ;;  %v569_v32 = vmul.f32 %v1681_v29, %v2143_v43  ;;  %v1149_v29 = vsel %vm334_vm2, %v2005_v39, -inf }
 0x578   :  { %v575_v52 = vpack.c.bf16 %v567_v25, %v567_v25  ;;  %v568_v5 = vmul.f32 %v1683_v46, %v2137_v63 }
 0x579   :  { %v577_v4 = vpack.c.bf16 %v569_v32, %v569_v32 }
 0x57a   :  { %v624_v34 = vunpack.c.l.b16 %v575_v52  ;;  %v576_v33 = vpack.c.bf16 %v568_v5, %v568_v5 }
 0x57b   :  { %v626_v30 = vunpack.c.l.b16 %v577_v4 }
 0x57c   :  { %v627_v26 = vpack.c.b16 %v624_v34, %v623_v55  ;;  %v625_v35 = vunpack.c.l.b16 %v576_v33 }
 0x57e   :  { %1508 = vmatmul.msk.bf16.vlgmr.msrb.gmra.mxu3 %vm334_vm2, %v627_v26  ;;  %v628_v38 = vpack.c.b16 %v626_v30, %v625_v35 }
 0x58e   :  { %1509 = vmatmul.msk.bf16.gmra.mxu3 %vm334_vm2, %v628_v38 }
 0x593   :  { %v853_v41 = vpop.xlane.xlu1 %852 }
 0x59b   :  { %v856_v27 = vpop.xlane.xlu2 %855 }
 0x5a3   :  { %v820_v18 = vpop.xlane.xlu2 %819  ;;  %v859_v48 = vpop.xlane.xlu1 %858 }
 0x5a4   :  { %v832_v56 = vsub.f32 %v2168_v45, %v820_v18 }
 0x5a6   :  { %v845_v23 = vmul.f32 1.442695, %v832_v56 }
 0x5a8   :  { %1684 = vpow2.f32 %v845_v23 }
 0x5a9   :  { %1686 = vrcp.f32 %v856_v27 }
 0x5aa   :  { %1688 = vrcp.f32 %v853_v41 }
 0x5ab   :  { %v823_v42 = vpop.xlane.xlu2 %822  ;;  %v862_v49 = vpop.xlane.xlu1 %861 }
 0x5ac   :  { %v833_v44 = vsub.f32 %v801_v61, %v823_v42 }
 0x5ae   :  { %v2199_v43 = vpop.eup %1684  ;;  %v847_v63 = vmul.f32 1.442695, %v833_v44  ;;  %v981_v44 = vld [vmem:[%s2450_s1 + $0x68] sm:$0xff] }
 0x5af   :  { %v866_v47 = vsel %vm334_vm2, %v2199_v43, 0.0  ;;  %v1687_v51 = vpop.eup %1686 }
 0x5b0   :  { %1690 = vpow2.f32 %v847_v63  ;;  %867 = vadd.xlane.f32.xlu2 %v866_v47  ;;  %v1689_v45 = vpop.eup %1688  ;;  %v884_v60 = vmul.f32 %v1687_v51, %v2164_v6  ;;  %v982_v63 = vld [vmem:[%s2450_s1 + $0x70] sm:$0xff] }
 0x5b1   :  { %v883_v7 = vmul.f32 %v1689_v45, %v2160_v36  ;;  %v910_v36 = vpop.permute.xlu0 %909 }
 0x5b2   :  { %v892_v8 = vpack.c.bf16 %v884_v60, %v884_v60 }
 0x5b3   :  { %v826_v53 = vpop.xlane.xlu2 %825  ;;  %v891_v10 = vpack.c.bf16 %v883_v7, %v883_v7 }
 0x5b4   :  { %v834_v54 = vsub.f32 %v802_v9, %v826_v53  ;;  %v904_v6 = vunpack.c.l.b16 %v892_v8 }
 0x5b5   :  { %v903_v15 = vunpack.c.l.b16 %v891_v10 }
 0x5b6   :  { %v2203_v59 = vpop.eup %1690  ;;  %v849_v61 = vmul.f32 1.442695, %v834_v54 }
 0x5b7   :  { %v869_v1 = vsel %vm334_vm2, %v2203_v59, 0.0  ;;  %v907_v16 = vpack.c.b16 %v904_v6, %v903_v15  ;;  %v1040_v15 = vld [vmem:[%s2450_s1 + $0x90] sm:$0xff] }
 0x5b8   :  { %1692 = vpow2.f32 %v849_v61  ;;  %1144 = vmax.xlane.f32.xlu2 %v1143_v0  ;;  %870 = vadd.xlane.f32.xlu1 %v869_v1 }
 0x5b9   :  { %1694 = vrcp.f32 %v862_v49  ;;  %v865_v35 = vpop.xlane.xlu0 %864 }
 0x5ba   :  { %1696 = vrcp.f32 %v859_v48  ;;  %v987_v48 = vpack.c.bf16 %v982_v63, %v981_v44 }
 0x5bb   :  { %v912_v9 = vpop.permute.xlu2 %911  ;;  %1698 = vrcp.f32 %v865_v35 }
 0x5bc   :  { %927 = vmatpush.bf16.msra.mxu3 %v912_v9  ;;  %1007 = vmatpush.bf16.msrb.mxu2 %v987_v48 }
 0x5be   :  { %v2211_v11 = vpop.eup %1692 }
 0x5bf   :  { %v872_v14 = vsel %vm334_vm2, %v2211_v11, 0.0  ;;  %v1695_v17 = vpop.eup %1694 }
 0x5c0   :  { %1147 = vmax.xlane.f32.xlu2 %v1146_v12  ;;  %873 = vadd.xlane.f32.xlu0 %v872_v14  ;;  %v1697_v21 = vpop.eup %1696  ;;  %v886_v22 = vmul.f32 %v1695_v17, %v2176_v62 }
 0x5c1   :  { %928 = vmatpush.bf16.msra.mxu3 %v910_v36  ;;  %v885_v25 = vmul.f32 %v1697_v21, %v2170_v50  ;;  %v1699_v27 = vpop.eup %1698  ;;  %v1037_v21 = vld [vmem:[%s2450_s1 + $0x78] sm:$0xff] }
 0x5c2   :  { %v894_v52 = vpack.c.bf16 %v886_v22, %v886_v22  ;;  %v887_v18 = vmul.f32 %v1699_v27, %v2182_v13  ;;  %v1038_v22 = vld [vmem:[%s2450_s1 + $0x80] sm:$0xff] }
 0x5c3   :  { %v953_v19 = vpop.permute.xlu1 %952  ;;  %v893_v34 = vpack.c.bf16 %v885_v25, %v885_v25 }
 0x5c4   :  { %1518 = vmatmul.msk.bf16.vlgmr.msra.gmra.mxu3 %vm334_vm2, %v907_v16  ;;  %968 = vmatpush.bf16.msrb.mxu0 %v953_v19  ;;  %v906_v26 = vunpack.c.l.b16 %v894_v52  ;;  %v895_v23 = vpack.c.bf16 %v887_v18, %v887_v18 }
 0x5c5   :  { %v905_v46 = vunpack.c.l.b16 %v893_v34  ;;  %v688_v34 = vpop.f32.mrf.mxu1 }
 0x5c6   :  { %v944_v51 = vunpack.c.l.b16 %v895_v23 }
 0x5c7   :  { %v908_v32 = vpack.c.b16 %v906_v26, %v905_v46  ;;  %v1639_v46 = vld [vmem:[%s2450_s1 + $0x5] ss:$0 sm:$0xff] }
 0x5c8   :  { %1141 = vmax.xlane.f32.xlu0 %v1140_v24  ;;  %v1045_v24 = vpack.c.bf16 %v1038_v22, %v1037_v21 }
 0x5cb   :  { %v951_v55 = vpop.permute.xlu1 %950 }
 0x5cc   :  { %969 = vmatpush.bf16.msrb.mxu0 %v951_v55 }
 0x5cd   :  { %v690_v26 = vpop.f32.mrf.mxu1 }
 0x5d0   :  { %1150 = vmax.xlane.f32.xlu0 %v1149_v29 }
 0x5d4   :  { %1519 = vmatmul.msk.bf16.gmra.mxu3 %vm334_vm2, %v908_v32  ;;  %v709_v32 = vadd.f32 %v1639_v46, %v688_v34 }
 0x601   :  { %v650_v62 = vpop.f32.mrf.mxu3 }
 0x609   :  { %v652_v5 = vpop.f32.mrf.mxu3 }
 0x60a   :  { %v664_v4 = vpack.c.bf16 %v652_v5, %v650_v62  ;;  %v710_v62 = vadd.f32 %v1639_v46, %v690_v26 }
 0x60c   :  { %1512 = vmatmul.msk.bf16.gmra.mxu1 %vm243_vm12, %v664_v4 }
 0x611   :  { %v655_v33 = vpop.f32.mrf.mxu3 }
 0x619   :  { %v657_v50 = vpop.f32.mrf.mxu3 }
 0x61a   :  { %v665_v30 = vpack.c.bf16 %v657_v50, %v655_v33  ;;  %v693_v50 = vpop.f32.mrf.mxu1 }
 0x61b   :  { %v711_v27 = vadd.f32 %v1639_v46, %v693_v50 }
 0x61c   :  { %1513 = vmatmul.msk.bf16.gmra.mxu1 %vm243_vm12, %v665_v30 }
 0x623   :  { %v868_v38 = vpop.xlane.xlu2 %867 }
 0x624   :  { %1700 = vrcp.f32 %v868_v38  ;;  %v695_v38 = vpop.f32.mrf.mxu1 }
 0x625   :  { %v712_v18 = vadd.f32 %v1639_v46, %v695_v38 }
 0x62a   :  { %v1701_v56 = vpop.eup %1700 }
 0x62b   :  { %v888_v41 = vmul.f32 %v1701_v56, %v2199_v43  ;;  %v871_v42 = vpop.xlane.xlu1 %870  ;;  %v1145_v26 = vpop.xlane.xlu2 %1144 }
 0x62c   :  { %1702 = vrcp.f32 %v871_v42 }
 0x62d   :  { %v896_v47 = vpack.c.bf16 %v888_v41, %v888_v41 }
 0x62f   :  { %v945_v53 = vunpack.c.l.b16 %v896_v47 }
 0x631   :  { %v948_v13 = vpack.c.b16 %v945_v53, %v944_v51 }
 0x632   :  { %v1703_v43 = vpop.eup %1702 }
 0x633   :  { %v874_v54 = vpop.xlane.xlu0 %873  ;;  %1520 = vmatmul.msk.bf16.vlgmr.msrb.gmra.mxu0 %vm334_vm2, %v948_v13  ;;  %v889_v45 = vmul.f32 %v1703_v43, %v2203_v59 }
 0x634   :  { %1704 = vrcp.f32 %v874_v54 }
 0x635   :  { %v897_v0 = vpack.c.bf16 %v889_v45, %v889_v45 }
 0x637   :  { %v946_v7 = vunpack.c.l.b16 %v897_v0 }
 0x63a   :  { %v1705_v60 = vpop.eup %1704 }
 0x63b   :  { %v890_v61 = vmul.f32 %v1705_v60, %v2211_v11  ;;  %v1039_v11 = vld [vmem:[%s2450_s1 + $0x88] sm:$0xff] }
 0x63c   :  { %v1046_v16 = vpack.c.bf16 %v1040_v15, %v1039_v11 }
 0x63d   :  { %v898_v1 = vpack.c.bf16 %v890_v61, %v890_v61 }
 0x63e   :  { %1065 = vmatpush.bf16.msrb.mxu3 %v1046_v16 }
 0x63f   :  { %v947_v8 = vunpack.c.l.b16 %v898_v1 }
 0x641   :  { %v949_v49 = vpack.c.b16 %v947_v8, %v946_v7 }
 0x642   :  { %1066 = vmatpush.bf16.msrb.mxu3 %v1045_v24 }
 0x643   :  { %1521 = vmatmul.msk.bf16.gmra.mxu0 %vm334_vm2, %v949_v49 }
 0x647   :  { %v930_v9 = vpop.f32.mrf.mxu3 }
 0x64f   :  { %v932_v10 = vpop.f32.mrf.mxu3 }
 0x650   :  { %v983_v6 = vpack.c.bf16 %v932_v10, %v930_v9  ;;  %v1640_v10 = vld [vmem:[%s2450_s1 + $0x6] ss:$0 sm:$0xff] }
 0x652   :  { %1522 = vmatmul.msk.bf16.vlgmr.msrb.gmra.mxu2 %vm243_vm12, %v983_v6 }
 0x657   :  { %v935_v12 = vpop.f32.mrf.mxu3 }
 0x65f   :  { %v937_v14 = vpop.f32.mrf.mxu3 }
 0x660   :  { %v984_v36 = vpack.c.bf16 %v937_v14, %v935_v12 }
 0x662   :  { %1523 = vmatmul.msk.bf16.gmra.mxu2 %vm243_vm12, %v984_v36 }
 0x689   :  { %v698_v44 = vpop.f32.mrf.mxu1 }
 0x68a   :  { %v713_v48 = vadd.f32 %v1639_v46, %v698_v44 }
 0x691   :  { %v700_v63 = vpop.f32.mrf.mxu1 }
 0x692   :  { %v714_v51 = vadd.f32 %v1639_v46, %v700_v63 }
 0x699   :  { %v703_v43 = vpop.f32.mrf.mxu1 }
 0x69a   :  { %v715_v0 = vadd.f32 %v1639_v46, %v703_v43 }
 0x6a1   :  { %v705_v61 = vpop.f32.mrf.mxu1 }
 0x6a2   :  { %v716_v1 = vadd.f32 %v1639_v46, %v705_v61 }
 0x6b0   :  { %v971_v59 = vpop.f32.mrf.mxu0 }
 0x6b8   :  { %v973_v17 = vpop.f32.mrf.mxu0 }
 0x6b9   :  { %v985_v19 = vpack.c.bf16 %v973_v17, %v971_v59 }
 0x6bb   :  { %1524 = vmatmul.msk.bf16.gmra.mxu2 %vm243_vm12, %v985_v19 }
 0x6c0   :  { %v976_v25 = vpop.f32.mrf.mxu0 }
 0x6c8   :  { %v978_v52 = vpop.f32.mrf.mxu0 }
 0x6c9   :  { %v986_v55 = vpack.c.bf16 %v978_v52, %v976_v25 }
 0x6cb   :  { %1525 = vmatmul.msk.bf16.gmra.mxu2 %vm243_vm12, %v986_v55 }
 0x6d5   :  { %v1009_v29 = vpop.f32.mrf.mxu2 }
 0x6d6   :  { %v1029_v4 = vadd.f32 %v1009_v29, %v709_v32 }
 0x6dd   :  { %v1011_v5 = vpop.f32.mrf.mxu2 }
 0x6de   :  { %v1030_v33 = vadd.f32 %v1011_v5, %v710_v62  ;;  %v1142_v62 = vpop.xlane.xlu0 %1141  ;;  %v1148_v5 = vpop.xlane.xlu2 %1147 }
 0x6e0   :  { %v1041_v30 = vpack.c.bf16 %v1030_v33, %v1029_v4 }
 0x6e2   :  { %1526 = vmatmul.msk.bf16.vlgmr.msrb.gmra.mxu3 %vm334_vm2, %v1041_v30 }
 0x6e5   :  { %v1014_v35 = vpop.f32.mrf.mxu2 }
 0x6e6   :  { %v1031_v23 = vadd.f32 %v1014_v35, %v711_v27 }
 0x6ed   :  { %v1016_v56 = vpop.f32.mrf.mxu2 }
 0x6ee   :  { %v1032_v41 = vadd.f32 %v1016_v56, %v712_v18  ;;  %v1151_v18 = vpop.xlane.xlu0 %1150 }
 0x6f0   :  { %v1042_v42 = vpack.c.bf16 %v1032_v41, %v1031_v23 }
 0x6f2   :  { %1527 = vmatmul.msk.bf16.gmra.mxu3 %vm334_vm2, %v1042_v42 }
 0x73e   :  { %v1019_v47 = vpop.f32.mrf.mxu2 }
 0x73f   :  { %v1033_v13 = vadd.f32 %v1019_v47, %v713_v48  ;;  %v1155_v47 = vsel %vm334_vm2, %v2023_v58, -inf }
 0x746   :  { %v1021_v53 = vpop.f32.mrf.mxu2 }
 0x747   :  { %v1034_v54 = vadd.f32 %v1021_v53, %v714_v51 }
 0x749   :  { %v1043_v45 = vpack.c.bf16 %v1034_v54, %v1033_v13 }
 0x74b   :  { %1528 = vmatmul.msk.bf16.gmra.mxu3 %vm334_vm2, %v1043_v45 }
 0x74e   :  { %v1024_v60 = vpop.f32.mrf.mxu2 }
 0x74f   :  { %v1035_v8 = vadd.f32 %v1024_v60, %v715_v0  ;;  %v1152_v0 = vsel %vm334_vm2, %v2021_v57, -inf }
 0x756   :  { %v1026_v7 = vpop.f32.mrf.mxu2 }
 0x757   :  { %v1036_v49 = vadd.f32 %v1026_v7, %v716_v1 }
 0x759   :  { %v1044_v9 = vpack.c.bf16 %v1036_v49, %v1035_v8 }
 0x75b   :  { %1529 = vmatmul.msk.bf16.gmra.mxu3 %vm334_vm2, %v1044_v9  ;;  %v2313_v9 = vsub.f32 %v1979_v2, %v1142_v62 }
 0x765   :  { %v1068_v6 = vpop.f32.mrf.mxu3 }
 0x766   :  { %v1089_v12 = vadd.f32 %v1640_v10, %v1068_v6  ;;  %v1098_v59 = vsel %vm1097_vm3, %v1068_v6, 0.0  ;;  %v2317_v6 = vsub.f32 %v2005_v39, %v1151_v18 }
 0x768   :  { %v1236_v14 = vsel %vm334_vm2, %v1089_v12, -inf  ;;  %v1178_v2 = vmul.f32 1.442695, %v2317_v6 }
 0x769   :  { %1237 = vmax.xlane.f32.xlu2 %v1236_v14  ;;  %v1158_v14 = vsel %vm334_vm2, %v2040_v28, -inf }
 0x76d   :  { %v1070_v36 = vpop.f32.mrf.mxu3 }
 0x76e   :  { %v1090_v11 = vadd.f32 %v1640_v10, %v1070_v36  ;;  %v1099_v15 = vsel %vm1097_vm3, %v1070_v36, 0.0  ;;  %v1172_v36 = vmul.f32 1.442695, %v2313_v9 }
 0x76f   :  { %v1100_v16 = vadd.f32 %v1099_v15, %v1098_v59 }
 0x770   :  { %v1239_v17 = vsel %vm334_vm2, %v1090_v11, -inf }
 0x771   :  { %1240 = vmax.xlane.f32.xlu0 %v1239_v17 }
 0x775   :  { %v1073_v19 = vpop.f32.mrf.mxu3 }
 0x776   :  { %v1091_v21 = vadd.f32 %v1640_v10, %v1073_v19  ;;  %v1101_v22 = vsel %vm1097_vm3, %v1073_v19, 0.0  ;;  %v2332_v19 = vsub.f32 %v2007_v40, %v1148_v5 }
 0x777   :  { %v2270_v24 = vadd.f32 %v1101_v22, %v1100_v16  ;;  %v2328_v16 = vsub.f32 %v1981_v3, %v1145_v26 }
 0x778   :  { %v1242_v25 = vsel %vm334_vm2, %v1091_v21, -inf }
 0x779   :  { %1243 = vmax.xlane.f32.xlu2 %v1242_v25  ;;  %v1174_v25 = vmul.f32 1.442695, %v2328_v16 }
 0x77d   :  { %v2273_v52 = vpop.f32.mrf.mxu3 }
 0x77e   :  { %v1092_v55 = vadd.f32 %v1640_v10, %v2273_v52 }
 0x780   :  { %v1245_v34 = vsel %vm334_vm2, %v1092_v55, -inf }
 0x781   :  { %1246 = vmax.xlane.f32.xlu0 %v1245_v34 }
 0x7ce   :  { %v1078_v29 = vpop.f32.mrf.mxu3 }
 0x7cf   :  { %v2277_v46 = vadd.f32 %v1640_v10, %v1078_v29  ;;  %v1111_v33 = vsel %vm1097_vm3, %v1078_v29, 0.0 }
 0x7d1   :  { %v1248_v32 = vsel %vm334_vm2, %v2277_v46, -inf }
 0x7d2   :  { %1249 = vmax.xlane.f32.xlu2 %v1248_v32 }
 0x7d6   :  { %v1080_v4 = vpop.f32.mrf.mxu3 }
 0x7d7   :  { %v2282_v50 = vadd.f32 %v1640_v10, %v1080_v4  ;;  %v1112_v30 = vsel %vm1097_vm3, %v1080_v4, 0.0 }
 0x7d8   :  { %v1113_v35 = vadd.f32 %v1112_v30, %v1111_v33 }
 0x7d9   :  { %v1251_v38 = vsel %vm334_vm2, %v2282_v50, -inf }
 0x7da   :  { %1252 = vmax.xlane.f32.xlu0 %v1251_v38 }
 0x7dc   :  { %v1238_v27 = vpop.xlane.xlu2 %1237 }
 0x7dd   :  { %v2287_v56 = vsub.f32 %v1089_v12, %v1238_v27  ;;  %v1161_v12 = vsel %vm334_vm2, %v2036_v20, -inf }
 0x7de   :  { %v1083_v23 = vpop.f32.mrf.mxu3 }
 0x7df   :  { %v1268_v41 = vmul.f32 1.442695, %v2287_v56  ;;  %v2290_v42 = vadd.f32 %v1640_v10, %v1083_v23  ;;  %v1114_v44 = vsel %vm1097_vm3, %v1083_v23, 0.0 }
 0x7e0   :  { %v1115_v63 = vadd.f32 %v1114_v44, %v1113_v35 }
 0x7e1   :  { %1706 = vpow2.f32 %v1268_v41  ;;  %v1254_v48 = vsel %vm334_vm2, %v2290_v42, -inf }
 0x7e2   :  { %1156 = vmax.xlane.f32.xlu0 %v1155_v47  ;;  %1255 = vmax.xlane.f32.xlu1 %v1254_v48 }
 0x7e4   :  { %v1241_v51 = vpop.xlane.xlu0 %1240 }
 0x7e5   :  { %v2300_v45 = vsub.f32 %v1090_v11, %v1241_v51 }
 0x7e6   :  { %v1085_v53 = vpop.f32.mrf.mxu3 }
 0x7e7   :  { %v1707_v13 = vpop.eup %1706  ;;  %v2297_v54 = vadd.f32 %v1640_v10, %v1085_v53  ;;  %v1116_v43 = vsel %vm1097_vm3, %v1085_v53, 0.0  ;;  %v1270_v7 = vmul.f32 1.442695, %v2300_v45 }
 0x7e8   :  { %v2302_v60 = vadd.f32 %v1116_v43, %v1115_v63  ;;  %v1284_v61 = vsel %vm334_vm2, %v1707_v13, 0.0 }
 0x7e9   :  { %v1257_v1 = vsel %vm334_vm2, %v2297_v54, -inf  ;;  %1708 = vpow2.f32 %v1270_v7 }
 0x7ea   :  { %1285 = vadd.xlane.f32.xlu0 %v1284_v61  ;;  %1153 = vmax.xlane.f32.xlu1 %v1152_v0 }
 0x7eb   :  { %1258 = vmax.xlane.f32.xlu2 %v1257_v1 }
 0x7ec   :  { %v1244_v8 = vpop.xlane.xlu2 %1243 }
 0x7ed   :  { %v2310_v49 = vsub.f32 %v1091_v21, %v1244_v8 }
 0x7ef   :  { %v1272_v10 = vmul.f32 1.442695, %v2310_v49  ;;  %v1709_v15 = vpop.eup %1708 }
 0x7f0   :  { %v1287_v22 = vsel %vm334_vm2, %v1709_v15, 0.0 }
 0x7f1   :  { %1710 = vpow2.f32 %v1272_v10 }
 0x7f2   :  { %1162 = vmax.xlane.f32.xlu1 %v1161_v12  ;;  %1712 = vpow2.f32 %v1172_v36 }
 0x7f3   :  { %1159 = vmax.xlane.f32.xlu2 %v1158_v14  ;;  %1714 = vpow2.f32 %v1178_v2 }
 0x7f4   :  { %v1247_v59 = vpop.xlane.xlu0 %1246 }
 0x7f5   :  { %v2325_v11 = vsub.f32 %v1092_v55, %v1247_v59  ;;  %v1176_v55 = vmul.f32 1.442695, %v2332_v19 }
 0x7f7   :  { %v1711_v39 = vpop.eup %1710  ;;  %v1274_v17 = vmul.f32 1.442695, %v2325_v11 }
 0x7f8   :  { %v1290_v21 = vsel %vm334_vm2, %v1711_v39, 0.0  ;;  %v1713_v3 = vpop.eup %1712 }
 0x7f9   :  { %1716 = vpow2.f32 %v1274_v17  ;;  %v1715_v34 = vpop.eup %1714  ;;  %v1188_v29 = vsel %vm334_vm2, %v1713_v3, 0.0 }
 0x7fa   :  { %1291 = vadd.xlane.f32.xlu1 %v1290_v21  ;;  %1718 = vpow2.f32 %v1174_v25  ;;  %v1197_v32 = vsel %vm334_vm2, %v1715_v34, 0.0 }
 0x7fb   :  { %1288 = vadd.xlane.f32.xlu2 %v1287_v22  ;;  %1720 = vpow2.f32 %v1176_v55  ;;  %v1641_v55 = vld [vmem:[%s2450_s1 + $0x7] ss:$0 sm:$0xff] }
 0x7ff   :  { %v1717_v26 = vpop.eup %1716 }
 0x800   :  { %v1293_v40 = vsel %vm334_vm2, %v1717_v26, 0.0  ;;  %v1719_v62 = vpop.eup %1718 }
 0x801   :  { %1294 = vadd.xlane.f32.xlu0 %v1293_v40  ;;  %v1721_v5 = vpop.eup %1720  ;;  %v1191_v4 = vsel %vm334_vm2, %v1719_v62, 0.0  ;;  %v1103_v40 = vsel %vm1097_vm3, %v2273_v52, 0.0 }
 0x802   :  { %1189 = vadd.xlane.f32.xlu1 %v1188_v29  ;;  %v1194_v33 = vsel %vm334_vm2, %v1721_v5, 0.0  ;;  %v1104_v5 = vadd.f32 %v1103_v40, %v2270_v24 }
 0x803   :  { %1198 = vadd.xlane.f32.xlu2 %v1197_v32  ;;  %v1805_v32 = vmov 32.0  }
 0x809   :  { %1192 = vadd.xlane.f32.xlu0 %v1191_v4 }
 0x80a   :  { %1195 = vadd.xlane.f32.xlu1 %v1194_v33 }
 0x845   :  { %v1250_v30 = vpop.xlane.xlu2 %1249 }
 0x846   :  { %v2344_v35 = vsub.f32 %v2277_v46, %v1250_v30  ;;  %v1105_v30 = vrot.slane %v1104_v5, 4 }
 0x848   :  { %v1276_v38 = vmul.f32 1.442695, %v2344_v35 }
 0x84a   :  { %1722 = vpow2.f32 %v1276_v38  ;;  %v1118_v38 = vrot.slane %v2302_v60, 4 }
 0x84d   :  { %v1253_v27 = vpop.xlane.xlu0 %1252 }
 0x84e   :  { %v2348_v18 = vsub.f32 %v2282_v50, %v1253_v27 }
 0x850   :  { %v1723_v23 = vpop.eup %1722  ;;  %v1278_v41 = vmul.f32 1.442695, %v2348_v18 }
 0x851   :  { %v1296_v44 = vsel %vm334_vm2, %v1723_v23, 0.0 }
 0x852   :  { %1724 = vpow2.f32 %v1278_v41  ;;  %1297 = vadd.xlane.f32.xlu2 %v1296_v44  ;;  %v1106_v41 = vadd.f32 %v1105_v30, %v1104_v5  ;;  %v1119_v44 = vadd.f32 %v1118_v38, %v2302_v60 }
 0x854   :  { %v1120_v24 = vrot.slane %v1119_v44, 2 }
 0x855   :  { %v1157_v63 = vpop.xlane.xlu0 %1156  ;;  %v1256_v47 = vpop.xlane.xlu1 %1255 }
 0x856   :  { %v2353_v48 = vsub.f32 %v2023_v58, %v1157_v63  ;;  %v2356_v46 = vsub.f32 %v2290_v42, %v1256_v47 }
 0x858   :  { %v1725_v51 = vpop.eup %1724  ;;  %v1182_v53 = vmul.f32 1.442695, %v2353_v48  ;;  %v1280_v50 = vmul.f32 1.442695, %v2356_v46 }
 0x859   :  { %v1299_v13 = vsel %vm334_vm2, %v1725_v51, 0.0 }
 0x85a   :  { %1726 = vpow2.f32 %v1182_v53  ;;  %1300 = vadd.xlane.f32.xlu2 %v1299_v13 }
 0x85b   :  { %1728 = vpow2.f32 %v1280_v50  ;;  %v1107_v50 = vrot.slane %v1106_v41, 2 }
 0x85d   :  { %v1154_v43 = vpop.xlane.xlu1 %1153  ;;  %v1286_v34 = vpop.xlane.xlu0 %1285 }
 0x85e   :  { %v2362_v61 = vsub.f32 %v2021_v57, %v1154_v43  ;;  %v1259_v0 = vpop.xlane.xlu2 %1258 }
 0x85f   :  { %v2365_v58 = vsub.f32 %v2297_v54, %v1259_v0 }
 0x860   :  { %v1727_v42 = vpop.eup %1726  ;;  %v1180_v1 = vmul.f32 1.442695, %v2362_v61 }
 0x861   :  { %v1729_v7 = vpop.eup %1728  ;;  %v1282_v8 = vmul.f32 1.442695, %v2365_v58  ;;  %v1203_v10 = vsel %vm334_vm2, %v1727_v42, 0.0 }
 0x862   :  { %1730 = vpow2.f32 %v1180_v1  ;;  %v1302_v12 = vsel %vm334_vm2, %v1729_v7, 0.0  ;;  %1204 = vadd.xlane.f32.xlu2 %v1203_v10  ;;  %v1121_v10 = vadd.f32 %v1120_v24, %v1119_v44 }
 0x863   :  { %1732 = vpow2.f32 %v1282_v8  ;;  %1303 = vadd.xlane.f32.xlu0 %v1302_v12  ;;  %v1108_v8 = vadd.f32 %v1107_v50, %v1106_v41 }
 0x865   :  { %v1163_v57 = vpop.xlane.xlu1 %1162 }
 0x866   :  { %v2372_v14 = vsub.f32 %v2036_v20, %v1163_v57  ;;  %v1160_v54 = vpop.xlane.xlu2 %1159 }
 0x867   :  { %v2375_v36 = vsub.f32 %v2040_v28, %v1160_v54 }
 0x868   :  { %v1731_v2 = vpop.eup %1730  ;;  %v1186_v59 = vmul.f32 1.442695, %v2372_v14 }
 0x869   :  { %v1733_v15 = vpop.eup %1732  ;;  %v1184_v39 = vmul.f32 1.442695, %v2375_v36  ;;  %v1200_v17 = vsel %vm334_vm2, %v1731_v2, 0.0 }
 0x86a   :  { %1734 = vpow2.f32 %v1186_v59  ;;  %v1305_v21 = vsel %vm334_vm2, %v1733_v15, 0.0  ;;  %v1122_v15 = vrot.slane %v1121_v10, 1 }
 0x86b   :  { %1201 = vadd.xlane.f32.xlu0 %v1200_v17  ;;  %1306 = vadd.xlane.f32.xlu1 %v1305_v21  ;;  %1736 = vpow2.f32 %v1184_v39  ;;  %v1109_v17 = vrot.slane %v1108_v8, 1 }
 0x86c   :  { %1738 = vrcp.f32 %v1805_v32 }
 0x86d   :  { %v1292_v26 = vpop.xlane.xlu1 %1291  ;;  %1740 = vlog2.f32 %v1286_v34 }
 0x86e   :  { %v1289_v3 = vpop.xlane.xlu2 %1288 }
 0x86f   :  { %1742 = vlog2.f32 %v1289_v3 }
 0x870   :  { %v1735_v20 = vpop.eup %1734  ;;  %1744 = vlog2.f32 %v1292_v26 }
 0x871   :  { %v1209_v22 = vsel %vm334_vm2, %v1735_v20, 0.0  ;;  %v1737_v25 = vpop.eup %1736 }
 0x872   :  { %v1206_v28 = vsel %vm334_vm2, %v1737_v25, 0.0  ;;  %v1739_v33 = vpop.eup %1738 }
 0x873   :  { %1210 = vadd.xlane.f32.xlu0 %v1209_v22  ;;  %1207 = vadd.xlane.f32.xlu1 %v1206_v28  ;;  %v1125_v23 = vmul.f32 32.0, %v1739_v33  ;;  %v1741_v52 = vpop.eup %1740  ;;  %vm1129_vm4 = vweird.f32 %v1739_v33 }
 0x874   :  { %v1295_v62 = vpop.xlane.xlu0 %1294  ;;  %v1309_v13 = vmul.f32 0.6931472, %v1741_v52 }
 0x875   :  { %v1190_v4 = vpop.xlane.xlu1 %1189  ;;  %v1743_v47 = vpop.eup %1742  ;;  %v1126_v51 = vsub.f32 1.0, %v1125_v23 }
 0x876   :  { %v1199_v29 = vpop.xlane.xlu2 %1198  ;;  %v1745_v53 = vpop.eup %1744  ;;  %v1311_v42 = vmul.f32 0.6931472, %v1743_v47  ;;  %v1324_v60 = vsub.f32 %v2287_v56, %v1309_v13 }
 0x877   :  { %v1313_v1 = vmul.f32 0.6931472, %v1745_v53  ;;  %v1127_v7 = vmul.f32 %v1739_v33, %v1126_v51 }
 0x878   :  { %v1325_v57 = vsub.f32 %v2300_v45, %v1311_v42  ;;  %v1332_v39 = vmul.f32 1.442695, %v1324_v60  ;;  %v1110_v45 = vadd.f32 %v1109_v17, %v1108_v8 }
 0x879   :  { %v1326_v2 = vsub.f32 %v2310_v49, %v1313_v1  ;;  %v1128_v21 = vadd.f32 %v1739_v33, %v1127_v7  ;;  %v1123_v49 = vadd.f32 %v1122_v15, %v1121_v10 }
 0x87a   :  { %1135 = vrot.lane.b32.xlu2 %v1641_v55, %s1804_s27  ;;  %v1334_v55 = vmul.f32 1.442695, %v1325_v57 }
 0x87b   :  { %v1336_v26 = vmul.f32 1.442695, %v1326_v2  ;;  %v1130_v32 = vsel %vm1129_vm4, %v1739_v33, %v1128_v21 }
 0x87c   :  { %v1193_v63 = vpop.xlane.xlu0 %1192  ;;  %v1131_v23 = vmul.f32 %v1130_v32, %v1110_v45  ;;  %v1132_v41 = vmul.f32 %v1130_v32, %v1123_v49 }
 0x87d   :  { %1746 = vlog2.f32 %v1193_v63  ;;  %v1196_v43 = vpop.xlane.xlu1 %1195 }
 0x87e   :  { %1748 = vlog2.f32 %v1295_v62 }
 0x87f   :  { %1750 = vlog2.f32 %v1190_v4 }
 0x880   :  { %1752 = vlog2.f32 %v1196_v43 }
 0x883   :  { %v1747_v12 = vpop.eup %1746 }
 0x884   :  { %v1749_v54 = vpop.eup %1748  ;;  %v1215_v22 = vmul.f32 0.6931472, %v1747_v12 }
 0x885   :  { %v1751_v59 = vpop.eup %1750  ;;  %v1315_v56 = vmul.f32 0.6931472, %v1749_v54 }
 0x886   :  { %v1753_v20 = vpop.eup %1752  ;;  %v1213_v40 = vmul.f32 0.6931472, %v1751_v59  ;;  %v1229_v62 = vsub.f32 %v2328_v16, %v1215_v22 }
 0x887   :  { %v1217_v5 = vmul.f32 0.6931472, %v1753_v20  ;;  %v1327_v30 = vsub.f32 %v2325_v11, %v1315_v56 }
 0x888   :  { %v1349_v44 = vsub.f32 %v1325_v57, %v1229_v62 }
 0x889   :  { %v1230_v52 = vsub.f32 %v2332_v19, %v1217_v5  ;;  %v1338_v47 = vmul.f32 1.442695, %v1327_v30 }
 0x88b   :  { %v1350_v7 = vsub.f32 %v1326_v2, %v1230_v52 }
 0x8c5   :  { %v1298_v27 = vpop.xlane.xlu2 %1297 }
 0x8c6   :  { %1754 = vlog2.f32 %v1298_v27  ;;  %v1228_v27 = vsub.f32 %v2313_v9, %v1213_v40 }
 0x8c8   :  { %v1348_v13 = vsub.f32 %v1324_v60, %v1228_v27 }
 0x8cc   :  { %v1755_v28 = vpop.eup %1754 }
 0x8cd   :  { %v1301_v0 = vpop.xlane.xlu2 %1300  ;;  %v1317_v4 = vmul.f32 0.6931472, %v1755_v28 }
 0x8ce   :  { %1756 = vlog2.f32 %v1301_v0 }
 0x8cf   :  { %1758 = vlog2.f32 %v1199_v29  ;;  %v1328_v33 = vsub.f32 %v2344_v35, %v1317_v4 }
 0x8d0   :  { %1760 = vpow2.f32 %v1332_v39 }
 0x8d4   :  { %v1757_v34 = vpop.eup %1756 }
 0x8d5   :  { %v1205_v25 = vpop.xlane.xlu2 %1204  ;;  %v1319_v38 = vmul.f32 0.6931472, %v1757_v34  ;;  %v1759_v29 = vpop.eup %1758 }
 0x8d6   :  { %v1304_v3 = vpop.xlane.xlu0 %1303  ;;  %v1761_v63 = vpop.eup %1760  ;;  %v1219_v0 = vmul.f32 0.6931472, %v1759_v29 }
 0x8d7   :  { %1762 = vlog2.f32 %v1304_v3  ;;  %v1329_v51 = vsub.f32 %v2348_v18, %v1319_v38  ;;  %v1340_v18 = vmul.f32 1.442695, %v1328_v33  ;;  %v1356_v54 = vmul.f32 %v1761_v63, %v1348_v13 }
 0x8d8   :  { %1764 = vpow2.f32 %v1334_v55  ;;  %v1231_v60 = vsub.f32 %v2317_v6, %v1219_v0 }
 0x8d9   :  { %1766 = vpow2.f32 %v1336_v26  ;;  %v1342_v12 = vmul.f32 1.442695, %v1329_v51 }
 0x8da   :  { %1768 = vlog2.f32 %v1205_v25  ;;  %v1364_v25 = vsel %vm334_vm2, %v1356_v54, 0.0  ;;  %v1351_v34 = vsub.f32 %v1327_v30, %v1231_v60  ;;  %v1806_v54 = vmov 32  }
 0x8db   :  { %1632 = vset.pattern.permute.xlu1 %v1806_v54  ;;  %1633 = vset.pattern.permute.xlu0 %v1806_v54 }
 0x8dd   :  { %v1136_v16 = vpop.permute.xlu2 %1135  ;;  %v1763_v24 = vpop.eup %1762 }
 0x8de   :  { %v1202_v11 = vpop.xlane.xlu0 %1201  ;;  %v1307_v53 = vpop.xlane.xlu1 %1306  ;;  %v2400_v50 = vadd.f32 %v1136_v16, %v1131_v23  ;;  %v2402_v9 = vadd.f32 %v1136_v16, %v1132_v41  ;;  %v1321_v57 = vmul.f32 0.6931472, %v1763_v24 }
 0x8df   :  { %1770 = vlog2.f32 %v1202_v11  ;;  %v1765_v43 = vpop.eup %1764 }
 0x8e0   :  { %1772 = vlog2.f32 %v1307_v53  ;;  %v1390_v19 = vsel %vm1389_vm5, %v2400_v50, -inf  ;;  %v1391_v35 = vsel %vm1389_vm5, %v2402_v9, -inf  ;;  %v1767_v42 = vpop.eup %1766  ;;  %v1357_v1 = vmul.f32 %v1765_v43, %v1349_v44 }
 0x8e1   :  { %v1392_v8 = vmax.f32 %v1390_v19, %v1391_v35  ;;  %v1769_v10 = vpop.eup %1768  ;;  %1774 = vpow2.f32 %v1338_v47  ;;  %v1358_v39 = vmul.f32 %v1767_v42, %v1350_v7  ;;  %v1330_v2 = vsub.f32 %v2356_v46, %v1321_v57 }
 0x8e2   :  { %v1365_v15 = vsel %vm334_vm2, %v1357_v1, 0.0  ;;  %1776 = vpow2.f32 %v1340_v18  ;;  %v1223_v17 = vmul.f32 0.6931472, %v1769_v10 }
 0x8e3   :  { %1393 = vmax.xlane.f32.xlu0 %v1392_v8  ;;  %1778 = vpow2.f32 %v1342_v12  ;;  %v1366_v3 = vadd.f32 %v1365_v15, %v1364_v25  ;;  %v1367_v26 = vsel %vm334_vm2, %v1358_v39, 0.0  ;;  %v1344_v46 = vmul.f32 1.442695, %v1330_v2 }
 0x8e4   :  { %v1233_v40 = vsub.f32 %v2353_v48, %v1223_v17 }
 0x8e5   :  { %v1771_v59 = vpop.eup %1770  ;;  %v1368_v38 = vadd.f32 %v1367_v26, %v1366_v3 }
 0x8e6   :  { %v1773_v21 = vpop.eup %1772  ;;  %v1221_v20 = vmul.f32 0.6931472, %v1771_v59  ;;  %v1211_v22 = vpop.xlane.xlu0 %1210  ;;  %v1353_v41 = vsub.f32 %v1329_v51, %v1233_v40 }
 0x8e7   :  { %v1323_v28 = vmul.f32 0.6931472, %v1773_v21  ;;  %1780 = vlog2.f32 %v1211_v22  ;;  %v1208_v55 = vpop.xlane.xlu1 %1207  ;;  %v1775_v56 = vpop.eup %1774 }
 0x8e8   :  { %v1232_v6 = vsub.f32 %v2362_v61, %v1221_v20  ;;  %1782 = vlog2.f32 %v1208_v55  ;;  %v1777_v32 = vpop.eup %1776  ;;  %v1359_v62 = vmul.f32 %v1775_v56, %v1351_v34 }
 0x8e9   :  { %v1331_v45 = vsub.f32 %v2365_v58, %v1323_v28  ;;  %v1779_v4 = vpop.eup %1778 }
 0x8ea   :  { %v1352_v49 = vsub.f32 %v1328_v33, %v1232_v6  ;;  %v1369_v29 = vsel %vm334_vm2, %v1359_v62, 0.0  ;;  %v1361_v33 = vmul.f32 %v1779_v4, %v1353_v41 }
 0x8eb   :  { %v1346_v5 = vmul.f32 1.442695, %v1331_v45  ;;  %v1370_v52 = vadd.f32 %v1369_v29, %v1368_v38 }
 0x8ec   :  { %v1360_v27 = vmul.f32 %v1777_v32, %v1352_v49  ;;  %v1373_v43 = vsel %vm334_vm2, %v1361_v33, 0.0 }
 0x8ed   :  { %v1781_v23 = vpop.eup %1780  ;;  %1784 = vpow2.f32 %v1346_v5 }
 0x8ee   :  { %v1783_v61 = vpop.eup %1782  ;;  %1786 = vpow2.f32 %v1344_v46  ;;  %v1227_v30 = vmul.f32 0.6931472, %v1781_v23  ;;  %v1371_v48 = vsel %vm334_vm2, %v1360_v27, 0.0  ;;  %v28_v27 = vld [vmem:[%s2449_s0] sm:$0x3] }
 0x8ef   :  { %v1225_v44 = vmul.f32 0.6931472, %v1783_v61  ;;  %v1372_v47 = vadd.f32 %v1371_v48, %v1370_v52 }
 0x8f0   :  { %v1235_v58 = vsub.f32 %v2372_v14, %v1227_v30 }
 0x8f1   :  { %v1234_v16 = vsub.f32 %v2375_v36, %v1225_v44  ;;  %v1374_v0 = vadd.f32 %v1373_v43, %v1372_v47 }
 0x8f2   :  { %v1355_v63 = vsub.f32 %v1331_v45, %v1235_v58 }
 0x8f3   :  { %v1785_v11 = vpop.eup %1784  ;;  %v1354_v53 = vsub.f32 %v1330_v2, %v1234_v16  ;;  %v1455_v16 = vshrl.u32 %v161_v31, 7 }
 0x8f4   :  { %v1787_v51 = vpop.eup %1786  ;;  %v1363_v13 = vmul.f32 %v1785_v11, %v1355_v63 }
 0x8f5   :  { %v1362_v24 = vmul.f32 %v1787_v51, %v1354_v53  ;;  %vm1456_vm8 = vcmp.eq.s32.totalorder %v1869_v37, %v1455_v16 }
 0x8f6   :  { %v1377_v42 = vsel %vm334_vm2, %v1363_v13, 0.0 }
 0x8f7   :  { %v1375_v19 = vsel %vm334_vm2, %v1362_v24, 0.0 }
 0x8f8   :  { %v1376_v35 = vadd.f32 %v1375_v19, %v1374_v0 }
 0x8fa   :  { %v1378_v14 = vadd.f32 %v1377_v42, %v1376_v35 }
 0x8fc   :  { %1379 = vadd.xlane.f32.xlu1 %v1378_v14 }
 0x956   :  { %v1394_v57 = vpop.xlane.xlu0 %1393 }
 0x96f   :  { %v1380_v1 = vpop.xlane.xlu1 %1379 }
 0x970   :  { %v1381_v7 = vrot.slane %v1380_v1, 4 }
 0x972   :  { %v1382_v36 = vadd.f32 %v1381_v7, %v1380_v1 }
 0x974   :  { %v1383_v18 = vrot.slane %v1382_v36, 2 }
 0x976   :  { %v1384_v8 = vadd.f32 %v1383_v18, %v1382_v36 }
 0x978   :  { %v1385_v10 = vrot.slane %v1384_v8, 1 }
 0x97a   :  { %v1386_v12 = vadd.f32 %v1385_v10, %v1384_v8 }
 0x97c   :  { %1574 = vpush %v1386_v12 }
 0x97d   :  { %1576 = vpush %v1394_v57 }
 0x9ad   :  { %s2421_s1 = spop %1574 }
 0x9ae   :  { %s2423_s29 = spop %1576  ;;  %s1388_s8 = smul.f32 0.5, %s2421_s1 }
 0x9af   :  { %v1396_v60 = vstv %s2423_s29 }
 0x9b0   :  { %v1397_v59 = vsub.f32 %v2400_v50, %v1396_v60  ;;  %v1398_v15 = vsub.f32 %v2402_v9, %v1396_v60 }
 0x9b2   :  { %v1401_v39 = vmul.f32 1.442695, %v1398_v15  ;;  %v1399_v17 = vmul.f32 1.442695, %v1397_v59 }
 0x9b4   :  { %1788 = vpow2.f32 %v1401_v39 }
 0x9b5   :  { %1790 = vpow2.f32 %v1399_v17 }
 0x9ba   :  { %v1789_v21 = vpop.eup %1788 }
 0x9bb   :  { %v1405_v2 = vrot.slane %v1789_v21, 7  ;;  %v1791_v20 = vpop.eup %1790 }
 0x9bd   :  { %v1407_v22 = vsel %vm1406_vm6, %v1405_v2, %v1791_v20 }
 0x9be   :  { %1408 = vrot.lane.b32.xlu1 %v1407_v22, %s1799_s28 }
 0x9c6   :  { %1463 = vperm.xlu1 %1632, %v2402_v9  }
 0xa30   :  { %v1409_v25 = vpop.permute.xlu1 %1408 }
 0xa31   :  { %v1412_v28 = vsel %vm1411_vm7, %v1409_v25, 0.0 }
 0xa32   :  { %1413 = vadd.xlane.f32.xlu0 %v1412_v28 }
 0xaa5   :  { %v1414_v55 = vpop.xlane.xlu0 %1413 }
 0xaa6   :  { %v1415_v56 = vrot.slane %v1414_v55, 4 }
 0xaa8   :  { %v1416_v3 = vadd.f32 %v1415_v56, %v1414_v55 }
 0xaaa   :  { %v1417_v6 = vrot.slane %v1416_v3, 2 }
 0xaac   :  { %v1418_v34 = vadd.f32 %v1417_v6, %v1416_v3 }
 0xaae   :  { %v1419_v26 = vrot.slane %v1418_v34, 1 }
 0xab0   :  { %v1420_v40 = vadd.f32 %v1419_v26, %v1418_v34 }
 0xab2   :  { %1578 = vpush %v1420_v40 }
 0xae3   :  { %s1579_s30 = spop %1578 }
 0xae4   :  { %v1422_v45 = vstv %s1579_s30 }
 0xae5   :  { %1792 = vlog2.f32 %v1422_v45 }
 0xaeb   :  { %v1793_v46 = vpop.eup %1792 }
 0xaec   :  { %v1424_v49 = vmul.f32 0.6931472, %v1793_v46 }
 0xaee   :  { %1580 = vpush %v1424_v49 }
 0xb1f   :  { %s1581_s28 = spop %1580 }
 0xb20   :  { %s1426_s3 = sadd.f32 %s1581_s28, %s2423_s29 }
 0xb22   :  { %v1427_v32 = vstv %s1426_s3 }
 0xb23   :  { %v1429_v62 = vsub.f32 %v2402_v9, %v1427_v32  ;;  %v1428_v5 = vsub.f32 %v2400_v50, %v1427_v32 }
 0xb25   :  { %v1432_v4 = vrot.slane %v1429_v62, 7 }
 0xb27   :  { %v1433_v38 = vsel %vm1406_vm6, %v1432_v4, %v1428_v5 }
 0xb28   :  { %1434 = vrot.lane.b32.xlu0 %v1433_v38, %s1807_s4 }
 0xb30   :  { %1459 = vperm.xlu0 %1633, %v2400_v50   ;;  %v1464_v50 = vpop.permute.xlu1 %1463 }
 0xb31   :  { %v1465_v47 = vrot.slane %v1464_v50, 7 }
 0xb9a   :  { %v1435_v23 = vpop.permute.xlu0 %1434 }
 0xb9b   :  { %v1437_v41 = vmul.f32 %v1435_v23, %v28_v27 }
 0xb9d   :  { %1439 = vrot.lane.b32.xlu2 %v1437_v41, %s1808_s7 }
 0xba2   :  { %v1460_v63 = vpop.permute.xlu0 %1459 }
 0xba3   :  { %v1466_v11 = vsel %vm1406_vm6, %v1465_v47, %v1460_v63 }
 0xba4   :  { %v1468_v53 = vsel %vm1456_vm8, %v1466_v11, 0.0 }
 0xba5   :  { %v1470_v51 = vsel %vm1469_vm9, %v1468_v53, 0.0 }
 0xba6   :  { %v1471_v24 = vrot.slane %v1470_v51, 4 }
 0xba8   :  { %v1472_v13 = vadd.f32 %v1471_v24, %v1470_v51 }
 0xbaa   :  { %v1473_v43 = vrot.slane %v1472_v13, 2 }
 0xbac   :  { %v1474_v0 = vadd.f32 %v1473_v43, %v1472_v13 }
 0xbae   :  { %v1475_v19 = vrot.slane %v1474_v0, 1 }
 0xbb0   :  { %v1476_v31 = vadd.f32 %v1475_v19, %v1474_v0 }
 0xbf7   :  { %v1440_v61 = vpop.permute.xlu2 %1439 }
 0xbf8   :  { %v1442_v9 = vsel %vm1411_vm7, %v1440_v61, 0.0 }
 0xbf9   :  { %1443 = vadd.xlane.f32.xlu2 %v1442_v9 }
 0xc6c   :  { %v1444_v30 = vpop.xlane.xlu2 %1443 }
 0xc6d   :  { %v1445_v29 = vrot.slane %v1444_v30, 4 }
 0xc6f   :  { %v1446_v44 = vadd.f32 %v1445_v29, %v1444_v30 }
 0xc71   :  { %v1447_v48 = vrot.slane %v1446_v44, 2 }
 0xc73   :  { %v1448_v58 = vadd.f32 %v1447_v48, %v1446_v44 }
 0xc75   :  { %v1449_v52 = vrot.slane %v1448_v58, 1 }
 0xc77   :  { %v1450_v33 = vadd.f32 %v1449_v52, %v1448_v58 }
 0xc79   :  { %1582 = vpush %v1450_v33 }
 0xcaa   :  { %s1583_s0 = spop %1582 }
 0xcab   :  { %s1452_s9 = ssub.f32 0.0, %s1583_s0 }
 0xcad   :  { %s1453_s10 = sadd.f32 %s1452_s9, %s1388_s8 }
 0xcaf   :  { %v1478_v35 = vstv %s1453_s10 }
 0xcb0   :  { %v1479_v42 = vsel %vm1477_vm10, %v1478_v35, 0.0 }
 0xcb1   :  { %v1480_v14 = vadd.f32 %v1479_v42, %v1476_v31 }
 0xcb3   :  { %1481 = vst [vmem:[%s2451_s2] sm:$0x1] %v1480_v14 }

</bundles_post_ra>
